<compile_context>
chip_gen: v5e
topology: v5e:2x2
jax: 0.10.0
libtpu: 0.0.40
codegen_flags: <defaults>
</compile_context>

<pallas_src>
import jax
import jax.numpy as jnp
from jax.experimental import pallas as pl
from jax.experimental.pallas import tpu as pltpu


# ----------------------------------------------------------------------------
# Fused forward-pass kernel (one image per grid step, everything in VMEM)
# ----------------------------------------------------------------------------
def _fused_cnn_kernel(x_ref, w1e_ref, w1o_ref, b1_ref, w2e_ref, w2o_ref, b2_ref,
                      wfc_ref, bfc_ref, o_ref, s1_ref, p1_ref, s2_ref, h2_ref):
    f32 = jnp.float32

    # ---- conv1 (5x5, 1 -> 16) + bias + ReLU ---------------------------------
    # Lowered form: for each kernel-row offset di, image rows [di, di+24) hit a
    # (28, 192) weight.  Even / odd output columns are produced as two slabs
    # laid out [h, w_half*16 + c] so the width max-pool is an elementwise max.
    acc_e = jnp.zeros((24, 192), f32)
    acc_o = jnp.zeros((24, 192), f32)
    for di in range(5):
        rows = x_ref[di:di + 24, :]                                  # (24, 28)
        acc_e = acc_e + jnp.dot(rows, w1e_ref[di], preferred_element_type=f32)
        acc_o = acc_o + jnp.dot(rows, w1o_ref[di], preferred_element_type=f32)
    s1e = jnp.maximum(acc_e + b1_ref[...], 0.0)                      # even columns
    s1o = jnp.maximum(acc_o + b1_ref[...], 0.0)                      # odd columns

    # ---- maxpool1 (2x2, stride 2) -------------------------------------------
    s1_ref[...] = jnp.maximum(s1e, s1o)                              # width-pooled (24, 192)
    hmax1 = jnp.maximum(s1_ref[0:23, :], s1_ref[1:24, :])            # height pairs; even rows valid
    rr = jax.lax.broadcasted_iota(jnp.int32, (12, 23), 0)
    cc = jax.lax.broadcasted_iota(jnp.int32, (12, 23), 1)
    rowsel = jnp.where(cc == 2 * rr, 1.0, 0.0)                       # picks rows 0,2,...,22
    p1_ref[...] = jnp.dot(rowsel, hmax1, preferred_element_type=f32)  # pool1: (12, 192)

    # ---- conv2 (5x5, 16 -> 32) + bias + ReLU --------------------------------
    acc2e = jnp.zeros((8, 128), f32)
    acc2o = jnp.zeros((8, 128), f32)
    for di in range(5):
        rows = p1_ref[di:di + 8, :]                                  # (8, 192)
        acc2e = acc2e + jnp.dot(rows, w2e_ref[di], preferred_element_type=f32)
        acc2o = acc2o + jnp.dot(rows, w2o_ref[di], preferred_element_type=f32)
    s2e = jnp.maximum(acc2e + b2_ref[...], 0.0)
    s2o = jnp.maximum(acc2o + b2_ref[...], 0.0)

    # ---- maxpool2 (2x2, stride 2) -------------------------------------------
    s2_ref[...] = jnp.maximum(s2e, s2o)                              # width-pooled (8, 128)
    h2_ref[...] = jnp.maximum(s2_ref[0:7, :], s2_ref[1:8, :])        # (7, 128); even rows valid

    # ---- fc1 (512 -> 10); PyTorch flatten order folded into wfc -------------
    logits = bfc_ref[...]                                            # (1, 10)
    for hp in range(4):
        logits = logits + jnp.dot(h2_ref[2 * hp:2 * hp + 1, :], wfc_ref[hp],
                                  preferred_element_type=f32)
    o_ref[...] = logits.astype(o_ref.dtype)


# ----------------------------------------------------------------------------
# Wrapper: one fused pallas_call, grid over batch
# ----------------------------------------------------------------------------
def cnn_forward(x_nchw, lowered_params):
    (w1e, w1o, b1_row, w2e, w2o, b2_row, wfc_low, bfc_row) = lowered_params
    B = x_nchw.shape[0]
    x = x_nchw.reshape(B, 28, 28).astype(jnp.float32)                # drop Cin=1 axis

    out = pl.pallas_call(
        _fused_cnn_kernel,
        out_shape=jax.ShapeDtypeStruct((B, 1, 10), jnp.float32),
        grid=(B,),
        in_specs=[
            pl.BlockSpec((None, 28, 28), lambda b: (b, 0, 0)),       # one image / step
            pl.BlockSpec((5, 28, 192), lambda b: (0, 0, 0)),         # conv1 (even cols)
            pl.BlockSpec((5, 28, 192), lambda b: (0, 0, 0)),         # conv1 (odd cols)
            pl.BlockSpec((1, 192), lambda b: (0, 0)),                # conv1 bias row
            pl.BlockSpec((5, 192, 128), lambda b: (0, 0, 0)),        # conv2 (even cols)
            pl.BlockSpec((5, 192, 128), lambda b: (0, 0, 0)),        # conv2 (odd cols)
            pl.BlockSpec((1, 128), lambda b: (0, 0)),                # conv2 bias row
            pl.BlockSpec((4, 128, 10), lambda b: (0, 0, 0)),         # fc weight
            pl.BlockSpec((1, 10), lambda b: (0, 0)),                 # fc bias row
        ],
        out_specs=pl.BlockSpec((None, 1, 10), lambda b: (b, 0, 0)),
        scratch_shapes=[
            pltpu.VMEM((24, 192), jnp.float32),   # width-pooled conv1
            pltpu.VMEM((12, 192), jnp.float32),   # pool1 output
            pltpu.VMEM((8, 128), jnp.float32),    # width-pooled conv2
            pltpu.VMEM((7, 128), jnp.float32),    # height-pair max of conv2
        ],
        compiler_params=pltpu.CompilerParams(
            dimension_semantics=("parallel",),
        ),
    )(x, w1e, w1o, b1_row, w2e, w2o, b2_row, wfc_low, bfc_row)
    return out.reshape(B, 10)


# ----------------------------------------------------------------------------
# One-time weight lowering (outside the kernel / hot path)
# ----------------------------------------------------------------------------
def _lowered_conv1(w1, parity):
    """(16,1,5,5) -> (5, 28, 12*16): W[di, w_in, j*16+c] = w1[c,0,di, w_in-(2j+parity)]."""
    w1t = jnp.transpose(w1[:, 0], (1, 2, 0)).astype(jnp.float32)     # (5,5,16) [di,dj,c]
    w_in = jnp.arange(28)[:, None]
    j = jnp.arange(12)[None, :]
    blocks = []
    for di in range(5):
        blk = jnp.zeros((28, 12, 16), jnp.float32)
        for dj in range(5):
            band = (w_in == 2 * j + parity + dj).astype(jnp.float32)  # (28, 12)
            blk = blk + band[:, :, None] * w1t[di, dj][None, None, :]
        blocks.append(blk.reshape(28, 192))
    return jnp.stack(blocks, axis=0)


def _lowered_conv2(w2, parity):
    """(32,16,5,5) -> (5, 12*16, 4*32): W[di, wp*16+c, j*32+o] = w2[o,c,di, wp-(2j+parity)]."""
    w2t = jnp.transpose(w2, (2, 3, 1, 0)).astype(jnp.float32)        # (5,5,16,32) [di,dj,c,o]
    wp = jnp.arange(12)[:, None]
    j = jnp.arange(4)[None, :]
    blocks = []
    for di in range(5):
        blk = jnp.zeros((12, 16, 4, 32), jnp.float32)
        for dj in range(5):
            band = (wp == 2 * j + parity + dj).astype(jnp.float32)    # (12, 4)
            blk = blk + band[:, None, :, None] * w2t[di, dj][None, :, None, :]
        blocks.append(blk.reshape(192, 128))
    return jnp.stack(blocks, axis=0)


def prepare_params(params):
    """Transform PyTorch-layout params into the lowered weights the kernel consumes."""
    w1, b1, w2, b2, wfc, bfc = params
    w1e = _lowered_conv1(w1, 0)
    w1o = _lowered_conv1(w1, 1)
    b1_row = jnp.tile(b1.astype(jnp.float32), 12).reshape(1, 192)     # [w*16+c] = b1[c]
    w2e = _lowered_conv2(w2, 0)
    w2o = _lowered_conv2(w2, 1)
    b2_row = jnp.tile(b2.astype(jnp.float32), 4).reshape(1, 128)      # [w*32+o] = b2[o]
    # fc1: fold PyTorch's (C,H,W) flatten and the pooled slab layout [w*32+c].
    wfc_r = wfc.astype(jnp.float32).reshape(10, 32, 4, 4)             # [n, c, h, w]
    wfc_low = jnp.transpose(wfc_r, (2, 3, 1, 0)).reshape(4, 128, 10)  # [h][w*32+c, n]
    bfc_row = bfc.astype(jnp.float32).reshape(1, 10)
    return (w1e, w1o, b1_row, w2e, w2o, b2_row, wfc_low, bfc_row)


def init_params(key):
    k1, k2, k3, k4, k5, k6 = jax.random.split(key, 6)
    w1 = jax.random.normal(k1, (16, 1, 5, 5), jnp.float32) * 0.2     # Conv2d(1, 16, 5)
    b1 = jax.random.normal(k2, (16,), jnp.float32) * 0.1
    w2 = jax.random.normal(k3, (32, 16, 5, 5), jnp.float32) * 0.05   # Conv2d(16, 32, 5)
    b2 = jax.random.normal(k4, (32,), jnp.float32) * 0.1
    wfc = jax.random.normal(k5, (10, 512), jnp.float32) * 0.05       # Linear(512, 10)
    bfc = jax.random.normal(k6, (10,), jnp.float32) * 0.1
    return (w1, b1, w2, b2, wfc, bfc)


# ----------------------------------------------------------------------------
# Pure-JAX reference (correctness check only)
# ----------------------------------------------------------------------------
def cnn_forward_ref(x_nchw, params):
    w1, b1, w2, b2, wfc, bfc = params

    def conv(x, w, b):
        y = jax.lax.conv_general_dilated(
            x, w, window_strides=(1, 1), padding="VALID",
            dimension_numbers=("NCHW", "OIHW", "NCHW"))
        return jnp.maximum(y + b[None, :, None, None], 0.0)

    def pool(x):
        return jax.lax.reduce_window(
            x, -jnp.inf, jax.lax.max,
            window_dimensions=(1, 1, 2, 2), window_strides=(1, 1, 2, 2),
            padding="VALID")

    out = pool(conv(x_nchw, w1, b1))
    out = pool(conv(out, w2, b2))
    out = out.reshape(out.shape[0], -1)
    return out @ wfc.T + bfc


if __name__ == "__main__":
    key = jax.random.PRNGKey(0)
    kx, kp = jax.random.split(key)
    # Input must be (B, 1, 28, 28) so the flattened FC input is 32*4*4 = 512.
    x = jax.random.normal(kx, (2, 1, 28, 28), jnp.float32)
    params = init_params(kp)
    lowered = prepare_params(params)

    fwd = jax.jit(cnn_forward)
    out = jax.block_until_ready(fwd(x, lowered))
    assert out.shape == (2, 10), out.shape

    ref = jax.block_until_ready(cnn_forward_ref(x, params))
    assert jnp.allclose(out, ref, atol=1e-3, rtol=1e-3), (out, ref)

    print("KERNEL_OK")
</pallas_src>

<mosaic_0001>
module attributes {stable_mosaic.version = 11 : i64} {
  func.func @_fused_cnn_kernel(%arg0: i32, %arg1: memref<1x28x28xf32, #tpu.memory_space<vmem>>, %arg2: memref<5x28x192xf32, #tpu.memory_space<vmem>>, %arg3: memref<5x28x192xf32, #tpu.memory_space<vmem>>, %arg4: memref<1x192xf32, #tpu.memory_space<vmem>>, %arg5: memref<5x192x128xf32, #tpu.memory_space<vmem>>, %arg6: memref<5x192x128xf32, #tpu.memory_space<vmem>>, %arg7: memref<1x128xf32, #tpu.memory_space<vmem>>, %arg8: memref<4x128x10xf32, #tpu.memory_space<vmem>>, %arg9: memref<1x10xf32, #tpu.memory_space<vmem>>, %arg10: memref<1x1x10xf32, #tpu.memory_space<vmem>>, %arg11: memref<24x192xf32, #tpu.memory_space<vmem>>, %arg12: memref<12x192xf32, #tpu.memory_space<vmem>>, %arg13: memref<8x128xf32, #tpu.memory_space<vmem>>, %arg14: memref<7x128xf32, #tpu.memory_space<vmem>>) attributes {dimension_semantics = [#tpu.dimension_semantics<parallel>], iteration_bounds = array<i64: 2>, scalar_prefetch = 0 : i64, scratch_operands = 4 : i64, tpu.core_type = #tpu.core_type<tc>, window_params = [{transform_indices = @transform_0, window_bounds = array<i64: 1, 28, 28>}, {pipeline_mode = #tpu.pipeline_mode<synchronous>, transform_indices = @transform_1, window_bounds = array<i64: 5, 28, 192>}, {pipeline_mode = #tpu.pipeline_mode<synchronous>, transform_indices = @transform_2, window_bounds = array<i64: 5, 28, 192>}, {pipeline_mode = #tpu.pipeline_mode<synchronous>, transform_indices = @transform_3, window_bounds = array<i64: 1, 192>}, {pipeline_mode = #tpu.pipeline_mode<synchronous>, transform_indices = @transform_4, window_bounds = array<i64: 5, 192, 128>}, {pipeline_mode = #tpu.pipeline_mode<synchronous>, transform_indices = @transform_5, window_bounds = array<i64: 5, 192, 128>}, {pipeline_mode = #tpu.pipeline_mode<synchronous>, transform_indices = @transform_6, window_bounds = array<i64: 1, 128>}, {pipeline_mode = #tpu.pipeline_mode<synchronous>, transform_indices = @transform_7, window_bounds = array<i64: 4, 128, 10>}, {pipeline_mode = #tpu.pipeline_mode<synchronous>, transform_indices = @transform_8, window_bounds = array<i64: 1, 10>}, {transform_indices = @transform_9, window_bounds = array<i64: 1, 1, 10>}]} {
    %cst = arith.constant 0.000000e+00 : f32
    %0 = vector.broadcast %cst : f32 to vector<24x192xf32>
    %cst_0 = arith.constant 0.000000e+00 : f32
    %1 = vector.broadcast %cst_0 : f32 to vector<24x192xf32>
    %c0 = arith.constant 0 : index
    %c0_1 = arith.constant 0 : index
    %c0_2 = arith.constant 0 : index
    %2 = vector.load %arg1[%c0, %c0_1, %c0_2] : memref<1x28x28xf32, #tpu.memory_space<vmem>>, vector<1x24x28xf32>
    %3 = vector.shape_cast %2 : vector<1x24x28xf32> to vector<24x28xf32>
    %c0_3 = arith.constant 0 : index
    %c0_4 = arith.constant 0 : index
    %c0_5 = arith.constant 0 : index
    %4 = vector.load %arg2[%c0_3, %c0_4, %c0_5] : memref<5x28x192xf32, #tpu.memory_space<vmem>>, vector<1x28x192xf32>
    %5 = vector.shape_cast %4 : vector<1x28x192xf32> to vector<28x192xf32>
    %cst_6 = arith.constant dense<0.000000e+00> : vector<24x192xf32>
    %6 = tpu.matmul %3, %5, %cst_6 {dimension_numbers = #tpu.dot_dimension_numbers<[1], [0], [0], [1], [0, 0, 1, 1], [], []>} : vector<24x28xf32>, vector<28x192xf32>, vector<24x192xf32> -> vector<24x192xf32>
    %7 = arith.addf %0, %6 : vector<24x192xf32>
    %c0_7 = arith.constant 0 : index
    %c0_8 = arith.constant 0 : index
    %c0_9 = arith.constant 0 : index
    %8 = vector.load %arg3[%c0_7, %c0_8, %c0_9] : memref<5x28x192xf32, #tpu.memory_space<vmem>>, vector<1x28x192xf32>
    %9 = vector.shape_cast %8 : vector<1x28x192xf32> to vector<28x192xf32>
    %cst_10 = arith.constant dense<0.000000e+00> : vector<24x192xf32>
    %10 = tpu.matmul %3, %9, %cst_10 {dimension_numbers = #tpu.dot_dimension_numbers<[1], [0], [0], [1], [0, 0, 1, 1], [], []>} : vector<24x28xf32>, vector<28x192xf32>, vector<24x192xf32> -> vector<24x192xf32>
    %11 = arith.addf %1, %10 : vector<24x192xf32>
    %c0_11 = arith.constant 0 : index
    %c1 = arith.constant 1 : index
    %c0_12 = arith.constant 0 : index
    %12 = vector.load %arg1[%c0_11, %c1, %c0_12] : memref<1x28x28xf32, #tpu.memory_space<vmem>>, vector<1x24x28xf32>
    %13 = vector.shape_cast %12 : vector<1x24x28xf32> to vector<24x28xf32>
    %c1_13 = arith.constant 1 : index
    %c0_14 = arith.constant 0 : index
    %c0_15 = arith.constant 0 : index
    %14 = vector.load %arg2[%c1_13, %c0_14, %c0_15] : memref<5x28x192xf32, #tpu.memory_space<vmem>>, vector<1x28x192xf32>
    %15 = vector.shape_cast %14 : vector<1x28x192xf32> to vector<28x192xf32>
    %cst_16 = arith.constant dense<0.000000e+00> : vector<24x192xf32>
    %16 = tpu.matmul %13, %15, %cst_16 {dimension_numbers = #tpu.dot_dimension_numbers<[1], [0], [0], [1], [0, 0, 1, 1], [], []>} : vector<24x28xf32>, vector<28x192xf32>, vector<24x192xf32> -> vector<24x192xf32>
    %17 = arith.addf %7, %16 : vector<24x192xf32>
    %c1_17 = arith.constant 1 : index
    %c0_18 = arith.constant 0 : index
    %c0_19 = arith.constant 0 : index
    %18 = vector.load %arg3[%c1_17, %c0_18, %c0_19] : memref<5x28x192xf32, #tpu.memory_space<vmem>>, vector<1x28x192xf32>
    %19 = vector.shape_cast %18 : vector<1x28x192xf32> to vector<28x192xf32>
    %cst_20 = arith.constant dense<0.000000e+00> : vector<24x192xf32>
    %20 = tpu.matmul %13, %19, %cst_20 {dimension_numbers = #tpu.dot_dimension_numbers<[1], [0], [0], [1], [0, 0, 1, 1], [], []>} : vector<24x28xf32>, vector<28x192xf32>, vector<24x192xf32> -> vector<24x192xf32>
    %21 = arith.addf %11, %20 : vector<24x192xf32>
    %c0_21 = arith.constant 0 : index
    %c2 = arith.constant 2 : index
    %c0_22 = arith.constant 0 : index
    %22 = vector.load %arg1[%c0_21, %c2, %c0_22] : memref<1x28x28xf32, #tpu.memory_space<vmem>>, vector<1x24x28xf32>
    %23 = vector.shape_cast %22 : vector<1x24x28xf32> to vector<24x28xf32>
    %c2_23 = arith.constant 2 : index
    %c0_24 = arith.constant 0 : index
    %c0_25 = arith.constant 0 : index
    %24 = vector.load %arg2[%c2_23, %c0_24, %c0_25] : memref<5x28x192xf32, #tpu.memory_space<vmem>>, vector<1x28x192xf32>
    %25 = vector.shape_cast %24 : vector<1x28x192xf32> to vector<28x192xf32>
    %cst_26 = arith.constant dense<0.000000e+00> : vector<24x192xf32>
    %26 = tpu.matmul %23, %25, %cst_26 {dimension_numbers = #tpu.dot_dimension_numbers<[1], [0], [0], [1], [0, 0, 1, 1], [], []>} : vector<24x28xf32>, vector<28x192xf32>, vector<24x192xf32> -> vector<24x192xf32>
    %27 = arith.addf %17, %26 : vector<24x192xf32>
    %c2_27 = arith.constant 2 : index
    %c0_28 = arith.constant 0 : index
    %c0_29 = arith.constant 0 : index
    %28 = vector.load %arg3[%c2_27, %c0_28, %c0_29] : memref<5x28x192xf32, #tpu.memory_space<vmem>>, vector<1x28x192xf32>
    %29 = vector.shape_cast %28 : vector<1x28x192xf32> to vector<28x192xf32>
    %cst_30 = arith.constant dense<0.000000e+00> : vector<24x192xf32>
    %30 = tpu.matmul %23, %29, %cst_30 {dimension_numbers = #tpu.dot_dimension_numbers<[1], [0], [0], [1], [0, 0, 1, 1], [], []>} : vector<24x28xf32>, vector<28x192xf32>, vector<24x192xf32> -> vector<24x192xf32>
    %31 = arith.addf %21, %30 : vector<24x192xf32>
    %c0_31 = arith.constant 0 : index
    %c3 = arith.constant 3 : index
    %c0_32 = arith.constant 0 : index
    %32 = vector.load %arg1[%c0_31, %c3, %c0_32] : memref<1x28x28xf32, #tpu.memory_space<vmem>>, vector<1x24x28xf32>
    %33 = vector.shape_cast %32 : vector<1x24x28xf32> to vector<24x28xf32>
    %c3_33 = arith.constant 3 : index
    %c0_34 = arith.constant 0 : index
    %c0_35 = arith.constant 0 : index
    %34 = vector.load %arg2[%c3_33, %c0_34, %c0_35] : memref<5x28x192xf32, #tpu.memory_space<vmem>>, vector<1x28x192xf32>
    %35 = vector.shape_cast %34 : vector<1x28x192xf32> to vector<28x192xf32>
    %cst_36 = arith.constant dense<0.000000e+00> : vector<24x192xf32>
    %36 = tpu.matmul %33, %35, %cst_36 {dimension_numbers = #tpu.dot_dimension_numbers<[1], [0], [0], [1], [0, 0, 1, 1], [], []>} : vector<24x28xf32>, vector<28x192xf32>, vector<24x192xf32> -> vector<24x192xf32>
    %37 = arith.addf %27, %36 : vector<24x192xf32>
    %c3_37 = arith.constant 3 : index
    %c0_38 = arith.constant 0 : index
    %c0_39 = arith.constant 0 : index
    %38 = vector.load %arg3[%c3_37, %c0_38, %c0_39] : memref<5x28x192xf32, #tpu.memory_space<vmem>>, vector<1x28x192xf32>
    %39 = vector.shape_cast %38 : vector<1x28x192xf32> to vector<28x192xf32>
    %cst_40 = arith.constant dense<0.000000e+00> : vector<24x192xf32>
    %40 = tpu.matmul %33, %39, %cst_40 {dimension_numbers = #tpu.dot_dimension_numbers<[1], [0], [0], [1], [0, 0, 1, 1], [], []>} : vector<24x28xf32>, vector<28x192xf32>, vector<24x192xf32> -> vector<24x192xf32>
    %41 = arith.addf %31, %40 : vector<24x192xf32>
    %c0_41 = arith.constant 0 : index
    %c4 = arith.constant 4 : index
    %c0_42 = arith.constant 0 : index
    %42 = vector.load %arg1[%c0_41, %c4, %c0_42] : memref<1x28x28xf32, #tpu.memory_space<vmem>>, vector<1x24x28xf32>
    %43 = vector.shape_cast %42 : vector<1x24x28xf32> to vector<24x28xf32>
    %c4_43 = arith.constant 4 : index
    %c0_44 = arith.constant 0 : index
    %c0_45 = arith.constant 0 : index
    %44 = vector.load %arg2[%c4_43, %c0_44, %c0_45] : memref<5x28x192xf32, #tpu.memory_space<vmem>>, vector<1x28x192xf32>
    %45 = vector.shape_cast %44 : vector<1x28x192xf32> to vector<28x192xf32>
    %cst_46 = arith.constant dense<0.000000e+00> : vector<24x192xf32>
    %46 = tpu.matmul %43, %45, %cst_46 {dimension_numbers = #tpu.dot_dimension_numbers<[1], [0], [0], [1], [0, 0, 1, 1], [], []>} : vector<24x28xf32>, vector<28x192xf32>, vector<24x192xf32> -> vector<24x192xf32>
    %47 = arith.addf %37, %46 : vector<24x192xf32>
    %c4_47 = arith.constant 4 : index
    %c0_48 = arith.constant 0 : index
    %c0_49 = arith.constant 0 : index
    %48 = vector.load %arg3[%c4_47, %c0_48, %c0_49] : memref<5x28x192xf32, #tpu.memory_space<vmem>>, vector<1x28x192xf32>
    %49 = vector.shape_cast %48 : vector<1x28x192xf32> to vector<28x192xf32>
    %cst_50 = arith.constant dense<0.000000e+00> : vector<24x192xf32>
    %50 = tpu.matmul %43, %49, %cst_50 {dimension_numbers = #tpu.dot_dimension_numbers<[1], [0], [0], [1], [0, 0, 1, 1], [], []>} : vector<24x28xf32>, vector<28x192xf32>, vector<24x192xf32> -> vector<24x192xf32>
    %51 = arith.addf %41, %50 : vector<24x192xf32>
    %c0_51 = arith.constant 0 : index
    %c0_52 = arith.constant 0 : index
    %52 = vector.load %arg4[%c0_51, %c0_52] : memref<1x192xf32, #tpu.memory_space<vmem>>, vector<1x192xf32>
    %53 = vector.broadcast %52 : vector<1x192xf32> to vector<24x192xf32>
    %54 = arith.addf %47, %53 : vector<24x192xf32>
    %cst_53 = arith.constant 0.000000e+00 : f32
    %55 = vector.broadcast %cst_53 : f32 to vector<24x192xf32>
    %56 = arith.maximumf %54, %55 : vector<24x192xf32>
    %c0_54 = arith.constant 0 : index
    %c0_55 = arith.constant 0 : index
    %57 = vector.load %arg4[%c0_54, %c0_55] : memref<1x192xf32, #tpu.memory_space<vmem>>, vector<1x192xf32>
    %58 = vector.broadcast %57 : vector<1x192xf32> to vector<24x192xf32>
    %59 = arith.addf %51, %58 : vector<24x192xf32>
    %cst_56 = arith.constant 0.000000e+00 : f32
    %60 = vector.broadcast %cst_56 : f32 to vector<24x192xf32>
    %61 = arith.maximumf %59, %60 : vector<24x192xf32>
    %62 = arith.maximumf %56, %61 : vector<24x192xf32>
    %c0_57 = arith.constant 0 : index
    %c0_58 = arith.constant 0 : index
    %63 = vector.load %arg11[%c0_57, %c0_58] : memref<24x192xf32, #tpu.memory_space<vmem>>, vector<24x192xf32>
    tpu.vector_store %arg11[%c0_57, %c0_58], %62 {strides = array<i32>} : memref<24x192xf32, #tpu.memory_space<vmem>>, vector<24x192xf32>,
    %c0_59 = arith.constant 0 : index
    %c0_60 = arith.constant 0 : index
    %64 = vector.load %arg11[%c0_59, %c0_60] : memref<24x192xf32, #tpu.memory_space<vmem>>, vector<23x192xf32>
    %c1_61 = arith.constant 1 : index
    %c0_62 = arith.constant 0 : index
    %65 = vector.load %arg11[%c1_61, %c0_62] : memref<24x192xf32, #tpu.memory_space<vmem>>, vector<23x192xf32>
    %66 = arith.maximumf %64, %65 : vector<23x192xf32>
    %67 = tpu.iota {dimensions = array<i32: 0>} : vector<12x23xi32>
    %68 = tpu.iota {dimensions = array<i32: 1>} : vector<12x23xi32>
    %c2_i32 = arith.constant 2 : i32
    %69 = vector.broadcast %c2_i32 : i32 to vector<12x23xi32>
    %70 = arith.muli %69, %67 : vector<12x23xi32>
    %71 = arith.cmpi eq, %68, %70 : vector<12x23xi32>
    %cst_63 = arith.constant 1.000000e+00 : f32
    %cst_64 = arith.constant 0.000000e+00 : f32
    %72 = vector.broadcast %cst_63 : f32 to vector<12x23xf32>
    %73 = vector.broadcast %cst_64 : f32 to vector<12x23xf32>
    %74 = arith.select %71, %72, %73 : vector<12x23xi1>, vector<12x23xf32>
    %cst_65 = arith.constant dense<0.000000e+00> : vector<12x192xf32>
    %75 = tpu.matmul %74, %66, %cst_65 {dimension_numbers = #tpu.dot_dimension_numbers<[1], [0], [0], [1], [0, 0, 1, 1], [], []>} : vector<12x23xf32>, vector<23x192xf32>, vector<12x192xf32> -> vector<12x192xf32>
    %c0_66 = arith.constant 0 : index
    %c0_67 = arith.constant 0 : index
    %76 = vector.load %arg12[%c0_66, %c0_67] : memref<12x192xf32, #tpu.memory_space<vmem>>, vector<12x192xf32>
    tpu.vector_store %arg12[%c0_66, %c0_67], %75 {strides = array<i32>} : memref<12x192xf32, #tpu.memory_space<vmem>>, vector<12x192xf32>,
    %cst_68 = arith.constant 0.000000e+00 : f32
    %77 = vector.broadcast %cst_68 : f32 to vector<8x128xf32>
    %cst_69 = arith.constant 0.000000e+00 : f32
    %78 = vector.broadcast %cst_69 : f32 to vector<8x128xf32>
    %c0_70 = arith.constant 0 : index
    %c0_71 = arith.constant 0 : index
    %79 = vector.load %arg12[%c0_70, %c0_71] : memref<12x192xf32, #tpu.memory_space<vmem>>, vector<8x192xf32>
    %c0_72 = arith.constant 0 : index
    %c0_73 = arith.constant 0 : index
    %c0_74 = arith.constant 0 : index
    %80 = vector.load %arg5[%c0_72, %c0_73, %c0_74] : memref<5x192x128xf32, #tpu.memory_space<vmem>>, vector<1x192x128xf32>
    %81 = vector.shape_cast %80 : vector<1x192x128xf32> to vector<192x128xf32>
    %cst_75 = arith.constant dense<0.000000e+00> : vector<8x128xf32>
    %82 = tpu.matmul %79, %81, %cst_75 {dimension_numbers = #tpu.dot_dimension_numbers<[1], [0], [0], [1], [0, 0, 1, 1], [], []>} : vector<8x192xf32>, vector<192x128xf32>, vector<8x128xf32> -> vector<8x128xf32>
    %83 = arith.addf %77, %82 : vector<8x128xf32>
    %c0_76 = arith.constant 0 : index
    %c0_77 = arith.constant 0 : index
    %c0_78 = arith.constant 0 : index
    %84 = vector.load %arg6[%c0_76, %c0_77, %c0_78] : memref<5x192x128xf32, #tpu.memory_space<vmem>>, vector<1x192x128xf32>
    %85 = vector.shape_cast %84 : vector<1x192x128xf32> to vector<192x128xf32>
    %cst_79 = arith.constant dense<0.000000e+00> : vector<8x128xf32>
    %86 = tpu.matmul %79, %85, %cst_79 {dimension_numbers = #tpu.dot_dimension_numbers<[1], [0], [0], [1], [0, 0, 1, 1], [], []>} : vector<8x192xf32>, vector<192x128xf32>, vector<8x128xf32> -> vector<8x128xf32>
    %87 = arith.addf %78, %86 : vector<8x128xf32>
    %c1_80 = arith.constant 1 : index
    %c0_81 = arith.constant 0 : index
    %88 = vector.load %arg12[%c1_80, %c0_81] : memref<12x192xf32, #tpu.memory_space<vmem>>, vector<8x192xf32>
    %c1_82 = arith.constant 1 : index
    %c0_83 = arith.constant 0 : index
    %c0_84 = arith.constant 0 : index
    %89 = vector.load %arg5[%c1_82, %c0_83, %c0_84] : memref<5x192x128xf32, #tpu.memory_space<vmem>>, vector<1x192x128xf32>
    %90 = vector.shape_cast %89 : vector<1x192x128xf32> to vector<192x128xf32>
    %cst_85 = arith.constant dense<0.000000e+00> : vector<8x128xf32>
    %91 = tpu.matmul %88, %90, %cst_85 {dimension_numbers = #tpu.dot_dimension_numbers<[1], [0], [0], [1], [0, 0, 1, 1], [], []>} : vector<8x192xf32>, vector<192x128xf32>, vector<8x128xf32> -> vector<8x128xf32>
    %92 = arith.addf %83, %91 : vector<8x128xf32>
    %c1_86 = arith.constant 1 : index
    %c0_87 = arith.constant 0 : index
    %c0_88 = arith.constant 0 : index
    %93 = vector.load %arg6[%c1_86, %c0_87, %c0_88] : memref<5x192x128xf32, #tpu.memory_space<vmem>>, vector<1x192x128xf32>
    %94 = vector.shape_cast %93 : vector<1x192x128xf32> to vector<192x128xf32>
    %cst_89 = arith.constant dense<0.000000e+00> : vector<8x128xf32>
    %95 = tpu.matmul %88, %94, %cst_89 {dimension_numbers = #tpu.dot_dimension_numbers<[1], [0], [0], [1], [0, 0, 1, 1], [], []>} : vector<8x192xf32>, vector<192x128xf32>, vector<8x128xf32> -> vector<8x128xf32>
    %96 = arith.addf %87, %95 : vector<8x128xf32>
    %c2_90 = arith.constant 2 : index
    %c0_91 = arith.constant 0 : index
    %97 = vector.load %arg12[%c2_90, %c0_91] : memref<12x192xf32, #tpu.memory_space<vmem>>, vector<8x192xf32>
    %c2_92 = arith.constant 2 : index
    %c0_93 = arith.constant 0 : index
    %c0_94 = arith.constant 0 : index
    %98 = vector.load %arg5[%c2_92, %c0_93, %c0_94] : memref<5x192x128xf32, #tpu.memory_space<vmem>>, vector<1x192x128xf32>
    %99 = vector.shape_cast %98 : vector<1x192x128xf32> to vector<192x128xf32>
    %cst_95 = arith.constant dense<0.000000e+00> : vector<8x128xf32>
    %100 = tpu.matmul %97, %99, %cst_95 {dimension_numbers = #tpu.dot_dimension_numbers<[1], [0], [0], [1], [0, 0, 1, 1], [], []>} : vector<8x192xf32>, vector<192x128xf32>, vector<8x128xf32> -> vector<8x128xf32>
    %101 = arith.addf %92, %100 : vector<8x128xf32>
    %c2_96 = arith.constant 2 : index
    %c0_97 = arith.constant 0 : index
    %c0_98 = arith.constant 0 : index
    %102 = vector.load %arg6[%c2_96, %c0_97, %c0_98] : memref<5x192x128xf32, #tpu.memory_space<vmem>>, vector<1x192x128xf32>
    %103 = vector.shape_cast %102 : vector<1x192x128xf32> to vector<192x128xf32>
    %cst_99 = arith.constant dense<0.000000e+00> : vector<8x128xf32>
    %104 = tpu.matmul %97, %103, %cst_99 {dimension_numbers = #tpu.dot_dimension_numbers<[1], [0], [0], [1], [0, 0, 1, 1], [], []>} : vector<8x192xf32>, vector<192x128xf32>, vector<8x128xf32> -> vector<8x128xf32>
    %105 = arith.addf %96, %104 : vector<8x128xf32>
    %c3_100 = arith.constant 3 : index
    %c0_101 = arith.constant 0 : index
    %106 = vector.load %arg12[%c3_100, %c0_101] : memref<12x192xf32, #tpu.memory_space<vmem>>, vector<8x192xf32>
    %c3_102 = arith.constant 3 : index
    %c0_103 = arith.constant 0 : index
    %c0_104 = arith.constant 0 : index
    %107 = vector.load %arg5[%c3_102, %c0_103, %c0_104] : memref<5x192x128xf32, #tpu.memory_space<vmem>>, vector<1x192x128xf32>
    %108 = vector.shape_cast %107 : vector<1x192x128xf32> to vector<192x128xf32>
    %cst_105 = arith.constant dense<0.000000e+00> : vector<8x128xf32>
    %109 = tpu.matmul %106, %108, %cst_105 {dimension_numbers = #tpu.dot_dimension_numbers<[1], [0], [0], [1], [0, 0, 1, 1], [], []>} : vector<8x192xf32>, vector<192x128xf32>, vector<8x128xf32> -> vector<8x128xf32>
    %110 = arith.addf %101, %109 : vector<8x128xf32>
    %c3_106 = arith.constant 3 : index
    %c0_107 = arith.constant 0 : index
    %c0_108 = arith.constant 0 : index
    %111 = vector.load %arg6[%c3_106, %c0_107, %c0_108] : memref<5x192x128xf32, #tpu.memory_space<vmem>>, vector<1x192x128xf32>
    %112 = vector.shape_cast %111 : vector<1x192x128xf32> to vector<192x128xf32>
    %cst_109 = arith.constant dense<0.000000e+00> : vector<8x128xf32>
    %113 = tpu.matmul %106, %112, %cst_109 {dimension_numbers = #tpu.dot_dimension_numbers<[1], [0], [0], [1], [0, 0, 1, 1], [], []>} : vector<8x192xf32>, vector<192x128xf32>, vector<8x128xf32> -> vector<8x128xf32>
    %114 = arith.addf %105, %113 : vector<8x128xf32>
    %c4_110 = arith.constant 4 : index
    %c0_111 = arith.constant 0 : index
    %115 = vector.load %arg12[%c4_110, %c0_111] : memref<12x192xf32, #tpu.memory_space<vmem>>, vector<8x192xf32>
    %c4_112 = arith.constant 4 : index
    %c0_113 = arith.constant 0 : index
    %c0_114 = arith.constant 0 : index
    %116 = vector.load %arg5[%c4_112, %c0_113, %c0_114] : memref<5x192x128xf32, #tpu.memory_space<vmem>>, vector<1x192x128xf32>
    %117 = vector.shape_cast %116 : vector<1x192x128xf32> to vector<192x128xf32>
    %cst_115 = arith.constant dense<0.000000e+00> : vector<8x128xf32>
    %118 = tpu.matmul %115, %117, %cst_115 {dimension_numbers = #tpu.dot_dimension_numbers<[1], [0], [0], [1], [0, 0, 1, 1], [], []>} : vector<8x192xf32>, vector<192x128xf32>, vector<8x128xf32> -> vector<8x128xf32>
    %119 = arith.addf %110, %118 : vector<8x128xf32>
    %c4_116 = arith.constant 4 : index
    %c0_117 = arith.constant 0 : index
    %c0_118 = arith.constant 0 : index
    %120 = vector.load %arg6[%c4_116, %c0_117, %c0_118] : memref<5x192x128xf32, #tpu.memory_space<vmem>>, vector<1x192x128xf32>
    %121 = vector.shape_cast %120 : vector<1x192x128xf32> to vector<192x128xf32>
    %cst_119 = arith.constant dense<0.000000e+00> : vector<8x128xf32>
    %122 = tpu.matmul %115, %121, %cst_119 {dimension_numbers = #tpu.dot_dimension_numbers<[1], [0], [0], [1], [0, 0, 1, 1], [], []>} : vector<8x192xf32>, vector<192x128xf32>, vector<8x128xf32> -> vector<8x128xf32>
    %123 = arith.addf %114, %122 : vector<8x128xf32>
    %c0_120 = arith.constant 0 : index
    %c0_121 = arith.constant 0 : index
    %124 = vector.load %arg7[%c0_120, %c0_121] : memref<1x128xf32, #tpu.memory_space<vmem>>, vector<1x128xf32>
    %125 = vector.broadcast %124 : vector<1x128xf32> to vector<8x128xf32>
    %126 = arith.addf %119, %125 : vector<8x128xf32>
    %cst_122 = arith.constant 0.000000e+00 : f32
    %127 = vector.broadcast %cst_122 : f32 to vector<8x128xf32>
    %128 = arith.maximumf %126, %127 : vector<8x128xf32>
    %c0_123 = arith.constant 0 : index
    %c0_124 = arith.constant 0 : index
    %129 = vector.load %arg7[%c0_123, %c0_124] : memref<1x128xf32, #tpu.memory_space<vmem>>, vector<1x128xf32>
    %130 = vector.broadcast %129 : vector<1x128xf32> to vector<8x128xf32>
    %131 = arith.addf %123, %130 : vector<8x128xf32>
    %cst_125 = arith.constant 0.000000e+00 : f32
    %132 = vector.broadcast %cst_125 : f32 to vector<8x128xf32>
    %133 = arith.maximumf %131, %132 : vector<8x128xf32>
    %134 = arith.maximumf %128, %133 : vector<8x128xf32>
    %c0_126 = arith.constant 0 : index
    %c0_127 = arith.constant 0 : index
    %135 = vector.load %arg13[%c0_126, %c0_127] : memref<8x128xf32, #tpu.memory_space<vmem>>, vector<8x128xf32>
    tpu.vector_store %arg13[%c0_126, %c0_127], %134 {strides = array<i32>} : memref<8x128xf32, #tpu.memory_space<vmem>>, vector<8x128xf32>,
    %c0_128 = arith.constant 0 : index
    %c0_129 = arith.constant 0 : index
    %136 = vector.load %arg13[%c0_128, %c0_129] : memref<8x128xf32, #tpu.memory_space<vmem>>, vector<7x128xf32>
    %c1_130 = arith.constant 1 : index
    %c0_131 = arith.constant 0 : index
    %137 = vector.load %arg13[%c1_130, %c0_131] : memref<8x128xf32, #tpu.memory_space<vmem>>, vector<7x128xf32>
    %138 = arith.maximumf %136, %137 : vector<7x128xf32>
    %c0_132 = arith.constant 0 : index
    %c0_133 = arith.constant 0 : index
    %139 = vector.load %arg14[%c0_132, %c0_133] : memref<7x128xf32, #tpu.memory_space<vmem>>, vector<7x128xf32>
    tpu.vector_store %arg14[%c0_132, %c0_133], %138 {strides = array<i32>} : memref<7x128xf32, #tpu.memory_space<vmem>>, vector<7x128xf32>,
    %c0_134 = arith.constant 0 : index
    %c0_135 = arith.constant 0 : index
    %140 = vector.load %arg9[%c0_134, %c0_135] : memref<1x10xf32, #tpu.memory_space<vmem>>, vector<1x10xf32>
    %c0_136 = arith.constant 0 : index
    %c0_137 = arith.constant 0 : index
    %141 = vector.load %arg14[%c0_136, %c0_137] : memref<7x128xf32, #tpu.memory_space<vmem>>, vector<1x128xf32>
    %c0_138 = arith.constant 0 : index
    %c0_139 = arith.constant 0 : index
    %c0_140 = arith.constant 0 : index
    %142 = vector.load %arg8[%c0_138, %c0_139, %c0_140] : memref<4x128x10xf32, #tpu.memory_space<vmem>>, vector<1x128x10xf32>
    %143 = vector.shape_cast %142 : vector<1x128x10xf32> to vector<128x10xf32>
    %cst_141 = arith.constant dense<0.000000e+00> : vector<1x10xf32>
    %144 = tpu.matmul %141, %143, %cst_141 {dimension_numbers = #tpu.dot_dimension_numbers<[1], [0], [0], [1], [0, 0, 1, 1], [], []>} : vector<1x128xf32>, vector<128x10xf32>, vector<1x10xf32> -> vector<1x10xf32>
    %145 = arith.addf %140, %144 : vector<1x10xf32>
    %c2_142 = arith.constant 2 : index
    %c0_143 = arith.constant 0 : index
    %146 = vector.load %arg14[%c2_142, %c0_143] : memref<7x128xf32, #tpu.memory_space<vmem>>, vector<1x128xf32>
    %c1_144 = arith.constant 1 : index
    %c0_145 = arith.constant 0 : index
    %c0_146 = arith.constant 0 : index
    %147 = vector.load %arg8[%c1_144, %c0_145, %c0_146] : memref<4x128x10xf32, #tpu.memory_space<vmem>>, vector<1x128x10xf32>
    %148 = vector.shape_cast %147 : vector<1x128x10xf32> to vector<128x10xf32>
    %cst_147 = arith.constant dense<0.000000e+00> : vector<1x10xf32>
    %149 = tpu.matmul %146, %148, %cst_147 {dimension_numbers = #tpu.dot_dimension_numbers<[1], [0], [0], [1], [0, 0, 1, 1], [], []>} : vector<1x128xf32>, vector<128x10xf32>, vector<1x10xf32> -> vector<1x10xf32>
    %150 = arith.addf %145, %149 : vector<1x10xf32>
    %c4_148 = arith.constant 4 : index
    %c0_149 = arith.constant 0 : index
    %151 = vector.load %arg14[%c4_148, %c0_149] : memref<7x128xf32, #tpu.memory_space<vmem>>, vector<1x128xf32>
    %c2_150 = arith.constant 2 : index
    %c0_151 = arith.constant 0 : index
    %c0_152 = arith.constant 0 : index
    %152 = vector.load %arg8[%c2_150, %c0_151, %c0_152] : memref<4x128x10xf32, #tpu.memory_space<vmem>>, vector<1x128x10xf32>
    %153 = vector.shape_cast %152 : vector<1x128x10xf32> to vector<128x10xf32>
    %cst_153 = arith.constant dense<0.000000e+00> : vector<1x10xf32>
    %154 = tpu.matmul %151, %153, %cst_153 {dimension_numbers = #tpu.dot_dimension_numbers<[1], [0], [0], [1], [0, 0, 1, 1], [], []>} : vector<1x128xf32>, vector<128x10xf32>, vector<1x10xf32> -> vector<1x10xf32>
    %155 = arith.addf %150, %154 : vector<1x10xf32>
    %c6 = arith.constant 6 : index
    %c0_154 = arith.constant 0 : index
    %156 = vector.load %arg14[%c6, %c0_154] : memref<7x128xf32, #tpu.memory_space<vmem>>, vector<1x128xf32>
    %c3_155 = arith.constant 3 : index
    %c0_156 = arith.constant 0 : index
    %c0_157 = arith.constant 0 : index
    %157 = vector.load %arg8[%c3_155, %c0_156, %c0_157] : memref<4x128x10xf32, #tpu.memory_space<vmem>>, vector<1x128x10xf32>
    %158 = vector.shape_cast %157 : vector<1x128x10xf32> to vector<128x10xf32>
    %cst_158 = arith.constant dense<0.000000e+00> : vector<1x10xf32>
    %159 = tpu.matmul %156, %158, %cst_158 {dimension_numbers = #tpu.dot_dimension_numbers<[1], [0], [0], [1], [0, 0, 1, 1], [], []>} : vector<1x128xf32>, vector<128x10xf32>, vector<1x10xf32> -> vector<1x10xf32>
    %160 = arith.addf %155, %159 : vector<1x10xf32>
    %c0_159 = arith.constant 0 : index
    %c0_160 = arith.constant 0 : index
    %c0_161 = arith.constant 0 : index
    %161 = vector.load %arg10[%c0_159, %c0_160, %c0_161] : memref<1x1x10xf32, #tpu.memory_space<vmem>>, vector<1x1x10xf32>
    %162 = vector.shape_cast %161 : vector<1x1x10xf32> to vector<1x10xf32>
    %163 = vector.shape_cast %160 : vector<1x10xf32> to vector<1x1x10xf32>
    tpu.vector_store %arg10[%c0_159, %c0_160, %c0_161], %163 {strides = array<i32>} : memref<1x1x10xf32, #tpu.memory_space<vmem>>, vector<1x1x10xf32>,
    return
  }
  func.func @transform_0(%arg0: i32) -> (i32, i32, i32) {
    %c0_i32 = arith.constant 0 : i32
    %c0_i32_0 = arith.constant 0 : i32
    %c0_i32_1 = arith.constant 0 : i32
    return %arg0, %c0_i32, %c0_i32_0 : i32, i32, i32
  }
  func.func @transform_1(%arg0: i32) -> (i32, i32, i32) {
    %c0_i32 = arith.constant 0 : i32
    %c0_i32_0 = arith.constant 0 : i32
    %c0_i32_1 = arith.constant 0 : i32
    %c0_i32_2 = arith.constant 0 : i32
    return %c0_i32, %c0_i32_0, %c0_i32_1 : i32, i32, i32
  }
  func.func @transform_2(%arg0: i32) -> (i32, i32, i32) {
    %c0_i32 = arith.constant 0 : i32
    %c0_i32_0 = arith.constant 0 : i32
    %c0_i32_1 = arith.constant 0 : i32
    %c0_i32_2 = arith.constant 0 : i32
    return %c0_i32, %c0_i32_0, %c0_i32_1 : i32, i32, i32
  }
  func.func @transform_3(%arg0: i32) -> (i32, i32) {
    %c0_i32 = arith.constant 0 : i32
    %c0_i32_0 = arith.constant 0 : i32
    %c0_i32_1 = arith.constant 0 : i32
    return %c0_i32, %c0_i32_0 : i32, i32
  }
  func.func @transform_4(%arg0: i32) -> (i32, i32, i32) {
    %c0_i32 = arith.constant 0 : i32
    %c0_i32_0 = arith.constant 0 : i32
    %c0_i32_1 = arith.constant 0 : i32
    %c0_i32_2 = arith.constant 0 : i32
    return %c0_i32, %c0_i32_0, %c0_i32_1 : i32, i32, i32
  }
  func.func @transform_5(%arg0: i32) -> (i32, i32, i32) {
    %c0_i32 = arith.constant 0 : i32
    %c0_i32_0 = arith.constant 0 : i32
    %c0_i32_1 = arith.constant 0 : i32
    %c0_i32_2 = arith.constant 0 : i32
    return %c0_i32, %c0_i32_0, %c0_i32_1 : i32, i32, i32
  }
  func.func @transform_6(%arg0: i32) -> (i32, i32) {
    %c0_i32 = arith.constant 0 : i32
    %c0_i32_0 = arith.constant 0 : i32
    %c0_i32_1 = arith.constant 0 : i32
    return %c0_i32, %c0_i32_0 : i32, i32
  }
  func.func @transform_7(%arg0: i32) -> (i32, i32, i32) {
    %c0_i32 = arith.constant 0 : i32
    %c0_i32_0 = arith.constant 0 : i32
    %c0_i32_1 = arith.constant 0 : i32
    %c0_i32_2 = arith.constant 0 : i32
    return %c0_i32, %c0_i32_0, %c0_i32_1 : i32, i32, i32
  }
  func.func @transform_8(%arg0: i32) -> (i32, i32) {
    %c0_i32 = arith.constant 0 : i32
    %c0_i32_0 = arith.constant 0 : i32
    %c0_i32_1 = arith.constant 0 : i32
    return %c0_i32, %c0_i32_0 : i32, i32
  }
  func.func @transform_9(%arg0: i32) -> (i32, i32, i32) {
    %c0_i32 = arith.constant 0 : i32
    %c0_i32_0 = arith.constant 0 : i32
    %c0_i32_1 = arith.constant 0 : i32
    return %arg0, %c0_i32, %c0_i32_0 : i32, i32, i32
  }
}

</mosaic_0001>

<bundles_post_ra>
// kernel: cnn_forward.1
= control target key start
LH: loop header
LB: loop body
LE: loop exit
PB: predicated region body
PF: predicated region fallthrough
CT: control target
= control target key end

     0   :  { %s3525_s0 = inlined_call_operand.vmem [shape: f32[2,28,28], index: 0, kind: input, shape index: {}]   ;;  %s3526_s1 = inlined_call_operand.vmem [shape: f32[5,28,192], index: 1, kind: input, shape index: {}]   ;;  %s3527_s2 = inlined_call_operand.hbm [shape: f32[5,28,192], index: 2, kind: input, shape index: {}]   ;;  %s3528_s3 = inlined_call_operand.vmem [shape: f32[1,192], index: 3, kind: input, shape index: {}]   ;;  %s3529_s4 = inlined_call_operand.hbm [shape: f32[5,192,128], index: 4, kind: input, shape index: {}]   ;;  %s3530_s5 = inlined_call_operand.hbm [shape: f32[5,192,128], index: 5, kind: input, shape index: {}]   ;;  %s3531_s6 = inlined_call_operand.vmem [shape: f32[1,128], index: 6, kind: input, shape index: {}]   ;;  %s3532_s7 = inlined_call_operand.vmem [shape: f32[4,128,10], index: 7, kind: input, shape index: {}]   ;;  %s3533_s8 = inlined_call_operand.vmem [shape: f32[1,10], index: 8, kind: input, shape index: {}]   ;;  %s3534_s9 = inlined_call_operand.hbm [shape: f32[2,1,10], index: 9, kind: output, shape index: {}]  }
   0x1   :  { %3536 = sst [smem:[#allocation18_spill]] %s3527_s2 }
   0x2   :  { %3537 = sst [smem:[#allocation19_spill]] %s3529_s4 }
   0x3   :  { %14 = vsyncpa [#allocation7], 0 }
   0x4   :  { %15 = vsyncpa [#allocation10], 0 }
   0x5   :  { %16 = vsyncpa [#allocation8], 0 }
   0x6   :  { %18 = vsyncpa [#allocation8 + $0x1], 0  ;;  %s2794_s30 = smov 0   ;;  %s2796_s10 = smov 0  }
   0x7   :  { %s2798_s11 = smov 0   ;;  %s2800_s12 = smov 0  }
   0x8 LB: > { %3538 = sst [smem:[#allocation16_spill]] %s2730_s11  ;;  %s2815_s13 = sadd.s32 4294967295, %s2734_s12   ;;  %s2734_s12 = sphi %s2800_s12, %s3550_s12   ;;  %s2730_s11 = sphi %s2798_s11, %s3547_s11   ;;  %s2726_s10 = sphi %s2796_s10, %s3549_s10   ;;  %s2722_s30 = sphi %s2794_s30, %s3548_s30  }
   0x9   : > { %s2303_s14 = sadd.s32 4294967294, %s2734_s12   ;;  %s2819_s15 = sadd.s32 1, %s2734_s12  }
   0xa   : > { %s225_s16 = sadd.s32 1, %s2730_s11  ;;  %s222_s17 = ssub.s32 %s2734_s12, %s2819_s15 }
   0xb   : > { %p235_p0 = scmp.ne.s32.totalorder %s2730_s11, %s2726_s10  ;;  %p223_p1 = scmp.eq.s32.totalorder %s222_s17, 0 }
   0xc   : > { %p236_p2 = scmp.eq.s32.totalorder %s2815_s13, 1  ;;  %p241_p3 = scmp.ne.s32.totalorder %s2726_s10, %s2722_s30 }
   0xd   : > { %p242_p4 = scmp.eq.s32.totalorder %s2303_s14, 1  ;;  %p2304_p7 = scmp.ge.s32.totalorder %s2734_s12, 1 }
   0xe   : > { %s2830_s18 = scalar_select %p223_p1, %s2730_s11, %s225_s16  }
   0xf   : > { %p2832_p5 = por %p236_p2, %p235_p0  ;;  %p2836_p6 = por %p242_p4, %p241_p3 }
  0x10   : > { %3539 = sst [smem:[#allocation17_spill]] %s2830_s18  ;;  %p249_p8 = scmp.lt.s32.totalorder %s2734_s12, 3 }
  0x11   : > { %p2526_p9 = scmp.eq.s32.totalorder %s2815_s13, 0  ;;  %s3543_s4 = sld [smem:[#allocation19_spill]] }
  0x12   : > { %p2843_p10 = pnand %p2304_p7, %p249_p8  ;;  %s2736_s25 = smov [#allocation9]  }
  0x13   : > { %s282_s26 = sshll.u32 %s2736_s25, 4  ;;  %s3545_s2 = sld [smem:[#allocation18_spill]]  ;;  %s283_s26 = int_to_ptr.vmem [resolvable:$true] %s282_s26 }
  0x14   : > { %p2512_p11 = pneg %p2843_p10  ;;  %s2737_s16 = smov 128  }
  0x15   : > { %s2738_s17 = smov 8   ;;  %s2739_s22 = smov [#allocation6]  }
  0x16   : > { %p2854_p12 = pnand %p2526_p9, %p2512_p11  ;;  %s265_s23 = sshll.u32 %s2739_s22, 4  ;;  %s266_s23 = int_to_ptr.vmem [resolvable:$true] %s265_s23 }
  0x17   : > { %s280_s24 = sshll.u32 %s3543_s4, 4  ;;  %s2740_s25 = smov 256   ;;  %s281_s24 = int_to_ptr.hbm [resolvable:$true] %s280_s24 }
  0x18   : > { %2518 = dma.hbm_to_vmem [thread:$0]  (!%p2854_p12), %s281_s24, 15360, %s283_s26, [#allocation10], %s2737_s16, %s2737_s16, %s2738_s17  }
  0x19   : > { %s263_s14 = sshll.u32 %s3545_s2, 4  ;;  %s2741_s4 = smov 16   ;;  %s264_s14 = int_to_ptr.hbm [resolvable:$true] %s263_s14 }
  0x1a   : > { %2515 = dma.hbm_to_vmem [thread:$0]  (!%p2854_p12), %s264_s14, 5120, %s266_s23, [#allocation7], %s2740_s25, %s2740_s25, %s2741_s4  }
  0x1b   : > { %s294_s28 = sshll.u32 %s3530_s5, 4  ;;  %s2742_s29 = smov [#allocation11]   ;;  %s295_s28 = int_to_ptr.hbm [resolvable:$true] %s294_s28 }
  0x1c   : > { %s296_s2 = sshll.u32 %s2742_s29, 4  ;;  %329 = sbr.rel (%p2843_p10) target bundleno = 864 (0x360), region = 56  ;;  %s297_s2 = int_to_ptr.vmem [resolvable:$true] %s296_s2 }
  0x1d   : > { %2521 = dma.hbm_to_vmem [thread:$0]  (!%p2854_p12), %s295_s28, 15360, %s297_s2, [#allocation10], %s2737_s16, %s2737_s16, %s2738_s17  }
  0x21   : > { %2709 = dma.done.wait (%p2526_p9), [#allocation7], 5120  }
  0x22   : > { %2711 = vsyncadd (%p2526_p9), [#allocation7], 4294962176 }
  0x23   : > { %2713 = dma.done.wait (%p2526_p9), [#allocation10], 30720  }
  0x24   : > { %2715 = vsyncadd (%p2526_p9), [#allocation10], 4294936576  ;;  %p375_p13 = scmp.lt.s32.totalorder %s2815_s13, 1  ;;  %vm421_vm0 = vcmask 1043456   ;;  %v2321_v0 = vld [vmem:[%s3526_s1 + $0x70] sm:$0xf]  ;;  %s2213_s11 = scalar_lea.hbm %s3534_s9, %s2815_s13 }
  0x25   : > { %v2322_v1 = vld [vmem:[%s3526_s1 + $0x78] sm:$0xf]  ;;  %v389_v2 = vld [vmem:[%s3526_s1 + $0x30] sm:$0xf]  ;;  %2323 = vmatpush.msk.msra.mxu0 %vm421_vm0, %v2321_v0  ;;  %v2319_v3 = vld [vmem:[%s3526_s1 + $0x60] sm:$0xff]  ;;  %vm411_vm1 = vcmask 228352  }
  0x26   : > { %s376_s4 = scalar_select %p375_p13, %s2815_s13, 1  ;;  %2327 = vmatpush.msk.msra.mxu1 %vm421_vm0, %v2322_v1  ;;  %v2320_v4 = vld [vmem:[%s3526_s1 + $0x68] sm:$0xff]  ;;  %v387_v5 = vld [vmem:[%s3526_s1 + $0x20] sm:$0xff]  ;;  %2331 = vmatpush.msk.msra.mxu2 %vm421_vm0, %v389_v2  ;;  %v2317_v6 = vld [vmem:[%s3526_s1 + $0x50] sm:$0xff]  ;;  %vm1205_vm2 = vcmask 1046528   ;;  %vm1183_vm3 = vcmask 523264  }
  0x27   : > { %2494 = vmatpush.msk.msra.mxu3 %vm421_vm0, %v389_v2  ;;  %v2318_v7 = vld [vmem:[%s3526_s1 + $0x58] sm:$0xff]  ;;  %441 = vmatpush.msra.mxu0 %v2319_v3  ;;  %v385_v8 = vld [vmem:[%s3526_s1 + $0x10] sm:$0xff]  ;;  %v2315_v9 = vld [vmem:[%s3526_s1 + $0x40] sm:$0xff]  ;;  %vm1239_vm5 = vcmask 187392   ;;  %vm1616_vm7 = vcmask 1045504   ;;  %vm1301_vm8 = vcmask 519168  }
  0x28   : > { %s2493_s2 = sshll.u32 %s376_s4, 5  ;;  %467 = vmatpush.msra.mxu1 %v2320_v4  ;;  %508 = vmatpush.msra.mxu2 %v387_v5  ;;  %v2316_v10 = vld [vmem:[%s3526_s1 + $0x48] sm:$0xff]  ;;  %v383_v11 = vld [vmem:[%s3526_s1] sm:$0xff]  ;;  %v397_v15 = vld [vmem:[#allocation6 + $0x30] sm:$0xf]  ;;  %vm1766_vm9 = vcmask 1044480  }
  0x29   : > { %s2916_s27 = scalar_lea.vmem %s3525_s0, %s2493_s2  ;;  %2495 = vmatpush.msra.mxu3 %v387_v5  ;;  %442 = vmatpush.msra.mxu0 %v2317_v6  ;;  %v390_v16 = vld [vmem:[%s3526_s1 + $0x38] sm:$0xf]  ;;  %v554_v17 = vld [vmem:[#allocation6 + $0x70] sm:$0xf]  ;;  %v395_v19 = vld [vmem:[#allocation6 + $0x20] sm:$0xff]  ;;  %s373_s28 = sand.u32 1, %s2726_s10  }
  0x2a   : > { %468 = vmatpush.msra.mxu1 %v2318_v7  ;;  %509 = vmatpush.msra.mxu2 %v385_v8  ;;  %v2928_v12 = vld [vmem:[%s2916_s27 + $0x1] sm:$0xff]  ;;  %v555_v18 = vld [vmem:[#allocation6 + $0x78] sm:$0xf]  ;;  %v393_v23 = vld [vmem:[#allocation6 + $0x10] sm:$0xff]  ;;  %s374_s18 = scalar_lea.vmem [#allocation12], %s373_s28  ;;  %s2217_s24 = sshll.u32 %s2213_s11, 4  ;;  %s2218_s24 = int_to_ptr.hbm [resolvable:$true] %s2217_s24 }
  0x2b   : > { %2496 = vmatpush.msra.mxu3 %v385_v8  ;;  %443 = vmatpush.msra.mxu0 %v2315_v9  ;;  %v2931_v13 = vld [vmem:[%s2916_s27] sm:$0xff]  ;;  %v2934_v14 = vld [vmem:[%s2916_s27 + $0x8] sm:$0xff]  ;;  %v386_v24 = vld [vmem:[%s3526_s1 + $0x18] sm:$0xff]  ;;  %s2215_s21 = sshll.u32 %s374_s18, 4  ;;  %vm2202_vm10 = vcmask 73728   ;;  %s2205_s26 = scalar_lea.sflag [#allocation8], %s373_s28  ;;  %s2216_s21 = int_to_ptr.vmem [resolvable:$true] %s2215_s21 }
  0x2c   : > { %469 = vmatpush.msra.mxu1 %v2316_v10  ;;  %510 = vmatpush.msra.mxu2 %v383_v11  ;;  %v388_v20 = vld [vmem:[%s3526_s1 + $0x28] sm:$0xff]  ;;  %v552_v21 = vld [vmem:[#allocation6 + $0x60] sm:$0xff]  ;;  %v550_v25 = vld [vmem:[#allocation6 + $0x50] sm:$0xff]  ;;  %s2678_s14 = sshra.s32 %s2218_s24, 4  ;;  %s2684_s17 = scalar_lea.hbm %s3534_s9, 2  ;;  %s2679_s14 = int_to_ptr.hbm [resolvable:$true] %s2678_s14 }
  0x2d   : > { %2497 = vmatpush.msra.mxu3 %v383_v11  ;;  %2324 = vmatmul.msk.f32.vlgmr.msra.gmra.mxu0 %vm411_vm1, %v2928_v12  ;;  %v553_v22 = vld [vmem:[#allocation6 + $0x68] sm:$0xff]  ;;  %v551_v26 = vld [vmem:[#allocation6 + $0x58] sm:$0xff]  ;;  %v391_v27 = vld [vmem:[#allocation6] sm:$0xff]  ;;  %s2680_s16 = scalar_lea.hbm %s2679_s14, 1  ;;  %p2685_p3 = scmp.lt.s32.totalorder %s2679_s14, %s3534_s9 }
  0x2e   : > { %2328 = vmatmul.msk.f32.vlgmr.msra.gmra.mxu1 %vm411_vm1, %v2928_v12  ;;  %2332 = vmatmul.msk.f32.vlgmr.msra.gmra.mxu2 %vm411_vm1, %v2931_v13  ;;  %v2958_v28 = vld [vmem:[%s2916_s27 + $0x9] sm:$0xff]  ;;  %v548_v31 = vld [vmem:[#allocation6 + $0x40] sm:$0xff]  ;;  %v398_v34 = vld [vmem:[#allocation6 + $0x38] sm:$0xf]  ;;  %p2681_p0 = scmp.ne.s32.totalorder %s2679_s14, %s2680_s16  ;;  %p2686_p4 = scmp.lt.s32.totalorder %s2684_s17, %s2680_s16 }
  0x2f   : > { %2333 = vmatmul.msk.f32.vlgmr.msra.gmra.mxu3 %vm411_vm1, %v2934_v14  ;;  %2347 = vmatpush.msk.msrb.mxu2 %vm421_vm0, %v397_v15  ;;  %v2961_v29 = vld [vmem:[%s2916_s27 + $0x10] sm:$0xff]  ;;  %v384_v30 = vld [vmem:[%s3526_s1 + $0x8] sm:$0xff]  ;;  %v2362_v36 = vld [vmem:[%s3526_s1 + $0xb8] sm:$0xf] }
  0x30   : > { %2335 = vmatpush.msk.msrb.mxu3 %vm421_vm0, %v390_v16  ;;  %2339 = vmatpush.msk.msrb.mxu0 %vm421_vm0, %v554_v17  ;;  %v549_v32 = vld [vmem:[#allocation6 + $0x48] sm:$0xff]  ;;  %v764_v33 = vld [vmem:[#allocation6 + $0xb0] sm:$0xf]  ;;  %v762_v37 = vld [vmem:[#allocation6 + $0xa0] sm:$0xff]  ;;  %p2682_p1 = pnand %p2681_p0, %p2832_p5  ;;  %p2687_p7 = por %p2686_p4, %p2685_p3 }
  0x31   : > { %2343 = vmatpush.msk.msrb.mxu1 %vm421_vm0, %v555_v18  ;;  %633 = vmatpush.msrb.mxu2 %v395_v19  ;;  %v2361_v35 = vld [vmem:[%s3526_s1 + $0xb0] sm:$0xf]  ;;  %v396_v38 = vld [vmem:[#allocation6 + $0x28] sm:$0xff]  ;;  %v2359_v39 = vld [vmem:[%s3526_s1 + $0xa0] sm:$0xff] }
  0x32   : > { %534 = vmatpush.msrb.mxu3 %v388_v20  ;;  %575 = vmatpush.msrb.mxu0 %v552_v21  ;;  %v2360_v40 = vld [vmem:[%s3526_s1 + $0xa8] sm:$0xff]  ;;  %v2989_v41 = vld [vmem:[%s2916_s27 + $0x11] sm:$0xff]  ;;  %v758_v44 = vld [vmem:[#allocation6 + $0x80] sm:$0xff]  ;;  %p2683_p2 = pneg %p2682_p1 }
  0x33   : > { %601 = vmatpush.msrb.mxu1 %v553_v22  ;;  %634 = vmatpush.msrb.mxu2 %v393_v23  ;;  %v760_v42 = vld [vmem:[#allocation6 + $0x90] sm:$0xff]  ;;  %v394_v43 = vld [vmem:[#allocation6 + $0x18] sm:$0xff]  ;;  %v392_v46 = vld [vmem:[#allocation6 + $0x8] sm:$0xff] }
  0x34   : > { %535 = vmatpush.msrb.mxu3 %v386_v24  ;;  %576 = vmatpush.msrb.mxu0 %v550_v25  ;;  %v2357_v45 = vld [vmem:[%s3526_s1 + $0x90] sm:$0xff]  ;;  %v2358_v47 = vld [vmem:[%s3526_s1 + $0x98] sm:$0xff]  ;;  %v2355_v48 = vld [vmem:[%s3526_s1 + $0x80] sm:$0xff]  ;;  %p2688_p8 = pnand %p2687_p7, %p2683_p2 }
  0x35   : > { %602 = vmatpush.msrb.mxu1 %v551_v26  ;;  %635 = vmatpush.msrb.mxu2 %v391_v27  ;;  %v922_v49 = vld [vmem:[#allocation6 + $0xf0] sm:$0xf]  ;;  %v2356_v50 = vld [vmem:[%s3526_s1 + $0x88] sm:$0xff]  ;;  %v920_v51 = vld [vmem:[#allocation6 + $0xe0] sm:$0xff] }
  0x36   : > { %2325 = vmatmul.msk.f32.gmra.mxu0 %vm411_vm1, %v2958_v28  ;;  %2329 = vmatmul.msk.f32.gmra.mxu1 %vm411_vm1, %v2958_v28  ;;  %v918_v52 = vld [vmem:[#allocation6 + $0xd0] sm:$0xff]  ;;  %v916_v53 = vld [vmem:[#allocation6 + $0xc0] sm:$0xff]  ;;  %v765_v54 = vld [vmem:[#allocation6 + $0xb8] sm:$0xf] }
  0x37   : > { %2334 = vmatmul.msk.f32.gmra.mxu3 %vm411_vm1, %v2961_v29  ;;  %2348 = vmatmul.msk.f32.vlgmr.msrb.gmra.mxu2 %vm411_vm1, %v2931_v13  ;;  %v763_v55 = vld [vmem:[#allocation6 + $0xa8] sm:$0xff]  ;;  %v761_v56 = vld [vmem:[#allocation6 + $0x98] sm:$0xff]  ;;  %v2385_v59 = vld [vmem:[%s3526_s1 + $0xf0] sm:$0xf] }
  0x38   : > { %536 = vmatpush.msrb.mxu3 %v384_v30  ;;  %577 = vmatpush.msrb.mxu0 %v548_v31  ;;  %v3024_v57 = vld [vmem:[%s2916_s27 + $0x2] sm:$0xff]  ;;  %v2386_v60 = vld [vmem:[%s3526_s1 + $0xf8] sm:$0xf]  ;;  %v2381_v63 = vld [vmem:[%s3526_s1 + $0xd0] sm:$0xff] }
  0x39   : > { %603 = vmatpush.msrb.mxu1 %v549_v32  ;;  %2371 = vmatpush.msk.msra.mxu2 %vm421_vm0, %v764_v33  ;;  %v759_v58 = vld [vmem:[#allocation6 + $0x88] sm:$0xff]  ;;  %v2383_v61 = vld [vmem:[%s3526_s1 + $0xe0] sm:$0xff]  ;;  %v2382_v0 = vld [vmem:[%s3526_s1 + $0xd8] sm:$0xff] }
  0x3a   : > { %2351 = vmatpush.msk.msra.mxu3 %vm421_vm0, %v398_v34  ;;  %2363 = vmatpush.msk.msra.mxu0 %vm421_vm0, %v2361_v35  ;;  %v2384_v62 = vld [vmem:[%s3526_s1 + $0xe8] sm:$0xff]  ;;  %v2379_v2 = vld [vmem:[%s3526_s1 + $0xc0] sm:$0xff]  ;;  %v1080_v4 = vld [vmem:[#allocation6 + $0x130] sm:$0xf] }
  0x3b   : > { %2367 = vmatpush.msk.msra.mxu1 %vm421_vm0, %v2362_v36  ;;  %785 = vmatpush.msra.mxu2 %v762_v37  ;;  %v673_v1 = vld [vmem:[%s2916_s27 + $0xa] sm:$0xff]  ;;  %v1078_v5 = vld [vmem:[#allocation6 + $0x120] sm:$0xff]  ;;  %v674_v7 = vld [vmem:[%s2916_s27 + $0x12] sm:$0xff] }
  0x3c   : > { %659 = vmatpush.msra.mxu3 %v396_v38  ;;  %712 = vmatpush.msra.mxu0 %v2359_v39  ;;  %v2380_v3 = vld [vmem:[%s3526_s1 + $0xc8] sm:$0xff]  ;;  %v1076_v6 = vld [vmem:[#allocation6 + $0x110] sm:$0xff]  ;;  %v1074_v8 = vld [vmem:[#allocation6 + $0x100] sm:$0xff] }
  0x3d   : > { %738 = vmatpush.msra.mxu1 %v2360_v40  ;;  %786 = vmatpush.msra.mxu2 %v760_v42  ;;  %v923_v9 = vld [vmem:[#allocation6 + $0xf8] sm:$0xf]  ;;  %v921_v10 = vld [vmem:[#allocation6 + $0xe8] sm:$0xff]  ;;  %v2407_v16 = vld [vmem:[%s3526_s1 + $0x120] sm:$0xff] }
  0x3e   : > { %2326 = vmatmul.msk.f32.gmra.mxu0 %vm411_vm1, %v2989_v41  ;;  %2330 = vmatmul.msk.f32.gmra.mxu1 %vm411_vm1, %v2989_v41  ;;  %v919_v11 = vld [vmem:[#allocation6 + $0xd8] sm:$0xff]  ;;  %v2408_v17 = vld [vmem:[%s3526_s1 + $0x128] sm:$0xff]  ;;  %v2405_v18 = vld [vmem:[%s3526_s1 + $0x110] sm:$0xff] }
  0x3f   : > { %2336 = vmatmul.msk.f32.vlgmr.msrb.gmra.mxu3 %vm411_vm1, %v2931_v13  ;;  %2349 = vmatmul.msk.f32.gmra.mxu2 %vm411_vm1, %v2934_v14  ;;  %v2410_v15 = vld [vmem:[%s3526_s1 + $0x138] sm:$0xf]  ;;  %v831_v20 = vld [vmem:[%s2916_s27 + $0xb] sm:$0xff]  ;;  %v2403_v21 = vld [vmem:[%s3526_s1 + $0x100] sm:$0xff] }
  0x40   : > { %660 = vmatpush.msra.mxu3 %v394_v43  ;;  %787 = vmatpush.msra.mxu2 %v758_v44  ;;  %v2406_v19 = vld [vmem:[%s3526_s1 + $0x118] sm:$0xff]  ;;  %v2404_v22 = vld [vmem:[%s3526_s1 + $0x108] sm:$0xff] }
  0x41   : > { %713 = vmatpush.msra.mxu0 %v2357_v45  ;;  %739 = vmatpush.msra.mxu1 %v2358_v47  ;;  %v832_v23 = vld [vmem:[%s2916_s27 + $0x13] sm:$0xff]  ;;  %v1079_v25 = vld [vmem:[#allocation6 + $0x128] sm:$0xff] }
  0x42   : > { %661 = vmatpush.msra.mxu3 %v392_v46  ;;  %2395 = vmatpush.msk.msrb.mxu2 %vm421_vm0, %v922_v49  ;;  %v1081_v24 = vld [vmem:[#allocation6 + $0x138] sm:$0xf]  ;;  %v1075_v27 = vld [vmem:[#allocation6 + $0x108] sm:$0xff] }
  0x43   : > { %714 = vmatpush.msra.mxu0 %v2355_v48  ;;  %740 = vmatpush.msra.mxu1 %v2356_v50  ;;  %v1077_v26 = vld [vmem:[#allocation6 + $0x118] sm:$0xff] }
  0x44   : > { %943 = vmatpush.msrb.mxu2 %v920_v51  ;;  %2375 = vmatpush.msk.msrb.mxu3 %vm421_vm0, %v765_v54  ;;  %v990_v30 = vld [vmem:[%s2916_s27 + $0x14] sm:$0xff] }
  0x46   : > { %2340 = vmatmul.msk.f32.vlgmr.msrb.gmra.mxu0 %vm411_vm1, %v2928_v12  ;;  %2344 = vmatmul.msk.f32.vlgmr.msrb.gmra.mxu1 %vm411_vm1, %v2928_v12  ;;  %v830_v12 = vld [vmem:[%s2916_s27 + $0x3] sm:$0xff] }
  0x47   : > { %2337 = vmatmul.msk.f32.gmra.mxu3 %vm411_vm1, %v2934_v14  ;;  %2350 = vmatmul.msk.f32.gmra.mxu2 %vm411_vm1, %v2961_v29 }
  0x48   : > { %944 = vmatpush.msrb.mxu2 %v918_v52  ;;  %811 = vmatpush.msrb.mxu3 %v763_v55 }
  0x49   : > { %2387 = vmatpush.msk.msrb.mxu0 %vm421_vm0, %v2385_v59  ;;  %2391 = vmatpush.msk.msrb.mxu1 %vm421_vm0, %v2386_v60 }
  0x4a   : > { %945 = vmatpush.msrb.mxu2 %v916_v53  ;;  %812 = vmatpush.msrb.mxu3 %v761_v56 }
  0x4b   : > { %870 = vmatpush.msrb.mxu0 %v2383_v61  ;;  %896 = vmatpush.msrb.mxu1 %v2384_v62 }
  0x4c   : > { %813 = vmatpush.msrb.mxu3 %v759_v58 }
  0x4d   : > { %871 = vmatpush.msrb.mxu0 %v2381_v63  ;;  %897 = vmatpush.msrb.mxu1 %v2382_v0 }
  0x4e   : > { %2341 = vmatmul.msk.f32.gmra.mxu0 %vm411_vm1, %v2958_v28  ;;  %2345 = vmatmul.msk.f32.gmra.mxu1 %vm411_vm1, %v2958_v28  ;;  %v988_v28 = vld [vmem:[%s2916_s27 + $0x4] sm:$0xff] }
  0x4f   : > { %2338 = vmatmul.msk.f32.gmra.mxu3 %vm411_vm1, %v2961_v29  ;;  %2372 = vmatmul.msk.f32.vlgmr.msra.gmra.mxu2 %vm411_vm1, %v3024_v57 }
  0x50   : > { %872 = vmatpush.msrb.mxu0 %v2379_v2  ;;  %898 = vmatpush.msrb.mxu1 %v2380_v3 }
  0x51   : > { %2419 = vmatpush.msk.msra.mxu2 %vm421_vm0, %v1080_v4 }
  0x53   : > { %1101 = vmatpush.msra.mxu2 %v1078_v5 }
  0x55   : > { %1102 = vmatpush.msra.mxu2 %v1076_v6 }
  0x56   : > { %2342 = vmatmul.msk.f32.gmra.mxu0 %vm411_vm1, %v2989_v41  ;;  %2346 = vmatmul.msk.f32.gmra.mxu1 %vm411_vm1, %v2989_v41 }
  0x57   : > { %2352 = vmatmul.msk.f32.vlgmr.msra.gmra.mxu3 %vm411_vm1, %v2931_v13  ;;  %2373 = vmatmul.msk.f32.gmra.mxu2 %vm411_vm1, %v673_v1  ;;  %v917_v13 = vld [vmem:[#allocation6 + $0xc8] sm:$0xff] }
  0x58   : > { %1103 = vmatpush.msra.mxu2 %v1074_v8  ;;  %2399 = vmatpush.msk.msra.mxu3 %vm421_vm0, %v923_v9 }
  0x5a   : > { %969 = vmatpush.msra.mxu3 %v921_v10 }
  0x5c   : > { %970 = vmatpush.msra.mxu3 %v919_v11 }
  0x5e   : > { %2364 = vmatmul.msk.f32.vlgmr.msra.gmra.mxu0 %vm411_vm1, %v3024_v57  ;;  %2368 = vmatmul.msk.f32.vlgmr.msra.gmra.mxu1 %vm411_vm1, %v3024_v57 }
  0x5f   : > { %2353 = vmatmul.msk.f32.gmra.mxu3 %vm411_vm1, %v2934_v14  ;;  %2374 = vmatmul.msk.f32.gmra.mxu2 %vm411_vm1, %v674_v7  ;;  %v2409_v14 = vld [vmem:[%s3526_s1 + $0x130] sm:$0xf] }
  0x60   : > { %971 = vmatpush.msra.mxu3 %v917_v13  ;;  %2411 = vmatpush.msk.msra.mxu0 %vm421_vm0, %v2409_v14 }
  0x61   : > { %2415 = vmatpush.msk.msra.mxu1 %vm421_vm0, %v2410_v15 }
  0x62   : > { %1028 = vmatpush.msra.mxu0 %v2407_v16 }
  0x63   : > { %1054 = vmatpush.msra.mxu1 %v2408_v17 }
  0x64   : > { %1029 = vmatpush.msra.mxu0 %v2405_v18 }
  0x65   : > { %1055 = vmatpush.msra.mxu1 %v2406_v19 }
  0x66   : > { %2365 = vmatmul.msk.f32.gmra.mxu0 %vm411_vm1, %v673_v1  ;;  %2369 = vmatmul.msk.f32.gmra.mxu1 %vm411_vm1, %v673_v1 }
  0x67   : > { %2354 = vmatmul.msk.f32.gmra.mxu3 %vm411_vm1, %v2961_v29  ;;  %2396 = vmatmul.msk.f32.vlgmr.msrb.gmra.mxu2 %vm411_vm1, %v830_v12  ;;  %v989_v29 = vld [vmem:[%s2916_s27 + $0xc] sm:$0xff] }
  0x68   : > { %1030 = vmatpush.msra.mxu0 %v2403_v21  ;;  %1056 = vmatpush.msra.mxu1 %v2404_v22 }
  0x6e   : > { %2366 = vmatmul.msk.f32.gmra.mxu0 %vm411_vm1, %v674_v7  ;;  %2370 = vmatmul.msk.f32.gmra.mxu1 %vm411_vm1, %v674_v7 }
  0x6f   : > { %2376 = vmatmul.msk.f32.vlgmr.msrb.gmra.mxu3 %vm411_vm1, %v3024_v57  ;;  %2397 = vmatmul.msk.f32.gmra.mxu2 %vm411_vm1, %v831_v20 }
  0x70   : > { %2423 = vmatpush.msk.msrb.mxu3 %vm421_vm0, %v1081_v24 }
  0x72   : > { %1127 = vmatpush.msrb.mxu3 %v1079_v25  ;;  %v1146_v25 = vld [vmem:[%s3528_s3] sm:$0x3] }
  0x74   : > { %1128 = vmatpush.msrb.mxu3 %v1077_v26 }
  0x76   : > { %2388 = vmatmul.msk.f32.vlgmr.msrb.gmra.mxu0 %vm411_vm1, %v830_v12  ;;  %2392 = vmatmul.msk.f32.vlgmr.msrb.gmra.mxu1 %vm411_vm1, %v830_v12 }
  0x77   : > { %2377 = vmatmul.msk.f32.gmra.mxu3 %vm411_vm1, %v673_v1  ;;  %2398 = vmatmul.msk.f32.gmra.mxu2 %vm411_vm1, %v832_v23 }
  0x78   : > { %1129 = vmatpush.msrb.mxu3 %v1075_v27 }
  0x7e   : > { %2389 = vmatmul.msk.f32.gmra.mxu0 %vm411_vm1, %v831_v20  ;;  %2393 = vmatmul.msk.f32.gmra.mxu1 %vm411_vm1, %v831_v20 }
  0x7f   : > { %2378 = vmatmul.msk.f32.gmra.mxu3 %vm411_vm1, %v674_v7  ;;  %2420 = vmatmul.msk.f32.vlgmr.msra.gmra.mxu2 %vm411_vm1, %v988_v28 }
  0x86   : > { %2390 = vmatmul.msk.f32.gmra.mxu0 %vm411_vm1, %v832_v23  ;;  %2394 = vmatmul.msk.f32.gmra.mxu1 %vm411_vm1, %v832_v23 }
  0x87   : > { %2400 = vmatmul.msk.f32.vlgmr.msra.gmra.mxu3 %vm411_vm1, %v830_v12  ;;  %2421 = vmatmul.msk.f32.gmra.mxu2 %vm411_vm1, %v989_v29 }
  0x8e   : > { %2412 = vmatmul.msk.f32.vlgmr.msra.gmra.mxu0 %vm411_vm1, %v988_v28  ;;  %2416 = vmatmul.msk.f32.vlgmr.msra.gmra.mxu1 %vm411_vm1, %v988_v28 }
  0x8f   : > { %2401 = vmatmul.msk.f32.gmra.mxu3 %vm411_vm1, %v831_v20  ;;  %2422 = vmatmul.msk.f32.gmra.mxu2 %vm411_vm1, %v990_v30 }
  0x96   : > { %2413 = vmatmul.msk.f32.gmra.mxu0 %vm411_vm1, %v989_v29  ;;  %2417 = vmatmul.msk.f32.gmra.mxu1 %vm411_vm1, %v989_v29 }
  0x97   : > { %2402 = vmatmul.msk.f32.gmra.mxu3 %vm411_vm1, %v832_v23 }
  0x9e   : > { %2414 = vmatmul.msk.f32.gmra.mxu0 %vm411_vm1, %v990_v30  ;;  %2418 = vmatmul.msk.f32.gmra.mxu1 %vm411_vm1, %v990_v30 }
  0x9f   : > { %2424 = vmatmul.msk.f32.vlgmr.msrb.gmra.mxu3 %vm411_vm1, %v988_v28 }
  0xa7   : > { %2425 = vmatmul.msk.f32.gmra.mxu3 %vm411_vm1, %v989_v29  ;;  %v1148_v29 = vperm.slane %v1146_v25, 0 }
  0xaa   : > { %v445_v31 = vpop.f32.mrf.mxu0 }
  0xab   : > { %v471_v32 = vpop.f32.mrf.mxu1 }
  0xaf   : > { %2426 = vmatmul.msk.f32.gmra.mxu3 %vm411_vm1, %v990_v30 }
  0xb1   : > { %v512_v33 = vpop.f32.mrf.mxu2 }
  0xb2   : > { %v515_v34 = vpop.f32.mrf.mxu3  ;;  %v513_v35 = vadd.f32 %v512_v33, %v445_v31 }
  0xb3   : > { %v448_v36 = vpop.f32.mrf.mxu0  ;;  %v474_v38 = vpop.f32.mrf.mxu1 }
  0xb4   : > { %v3145_v37 = vadd.f32 %v515_v34, %v448_v36 }
  0xba   : > { %v518_v39 = vpop.f32.mrf.mxu3  ;;  %v637_v40 = vpop.f32.mrf.mxu2 }
  0xbb   : > { %v451_v41 = vpop.f32.mrf.mxu0  ;;  %v477_v43 = vpop.f32.mrf.mxu1 }
  0xbc   : > { %v3147_v42 = vadd.f32 %v518_v39, %v451_v41 }
  0xc2   : > { %v538_v44 = vpop.f32.mrf.mxu3  ;;  %v640_v46 = vpop.f32.mrf.mxu2 }
  0xc3   : > { %v3149_v45 = vadd.f32 %v538_v44, %v471_v32  ;;  %v579_v47 = vpop.f32.mrf.mxu0  ;;  %v605_v49 = vpop.f32.mrf.mxu1 }
  0xc4   : > { %v638_v48 = vadd.f32 %v637_v40, %v579_v47 }
  0xca   : > { %v541_v50 = vpop.f32.mrf.mxu3  ;;  %v643_v52 = vpop.f32.mrf.mxu2 }
  0xcb   : > { %v3151_v51 = vadd.f32 %v541_v50, %v474_v38  ;;  %v582_v53 = vpop.f32.mrf.mxu0  ;;  %v608_v55 = vpop.f32.mrf.mxu1 }
  0xcc   : > { %v641_v54 = vadd.f32 %v640_v46, %v582_v53 }
  0xd2   : > { %v544_v56 = vpop.f32.mrf.mxu3  ;;  %v789_v58 = vpop.f32.mrf.mxu2 }
  0xd3   : > { %v3153_v57 = vadd.f32 %v544_v56, %v477_v43  ;;  %v585_v59 = vpop.f32.mrf.mxu0  ;;  %v611_v61 = vpop.f32.mrf.mxu1  ;;  %v824_v23 = vadd.f32 %v789_v58, %v638_v48 }
  0xd4   : > { %v644_v60 = vadd.f32 %v643_v52, %v585_v59 }
  0xda   : > { %v663_v62 = vpop.f32.mrf.mxu3  ;;  %v792_v0 = vpop.f32.mrf.mxu2 }
  0xdb   : > { %v3155_v63 = vadd.f32 %v663_v62, %v605_v49  ;;  %v716_v1 = vpop.f32.mrf.mxu0  ;;  %v742_v2 = vpop.f32.mrf.mxu1  ;;  %v826_v34 = vadd.f32 %v792_v0, %v641_v54 }
  0xdc   : > { %v751_v27 = vadd.f32 %v716_v1, %v513_v35 }
  0xe2   : > { %v666_v3 = vpop.f32.mrf.mxu3  ;;  %v795_v5 = vpop.f32.mrf.mxu2 }
  0xe3   : > { %v3157_v4 = vadd.f32 %v666_v3, %v608_v55  ;;  %v719_v6 = vpop.f32.mrf.mxu0  ;;  %v3159_v7 = vpop.f32.mrf.mxu1  ;;  %v828_v52 = vadd.f32 %v795_v5, %v644_v60 }
  0xe4   : > { %v753_v43 = vadd.f32 %v719_v6, %v3145_v37 }
  0xea   : > { %v669_v8 = vpop.f32.mrf.mxu3  ;;  %v947_v10 = vpop.f32.mrf.mxu2 }
  0xeb   : > { %v3161_v9 = vadd.f32 %v669_v8, %v611_v61  ;;  %v722_v11 = vpop.f32.mrf.mxu0  ;;  %v3163_v12 = vpop.f32.mrf.mxu1  ;;  %v982_v26 = vadd.f32 %v947_v10, %v824_v23  ;;  %v752_v8 = vadd.f32 %v742_v2, %v3149_v45  ;;  %v1228_v2 = vlaneseq }
  0xec   : > { %v755_v59 = vadd.f32 %v722_v11, %v3147_v42 }
  0xf2   : > { %v815_v13 = vpop.f32.mrf.mxu3  ;;  %v950_v14 = vpop.f32.mrf.mxu2 }
  0xf3   : > { %v874_v15 = vpop.f32.mrf.mxu0  ;;  %v900_v16 = vpop.f32.mrf.mxu1  ;;  %v984_v39 = vadd.f32 %v950_v14, %v826_v34  ;;  %v825_v11 = vadd.f32 %v815_v13, %v3155_v63  ;;  %v754_v34 = vadd.f32 %v3159_v7, %v3151_v51  ;;  %v1232_v7 = vand.u32 127, %v1228_v2 }
  0xf4   : > { %v909_v30 = vadd.f32 %v874_v15, %v751_v27 }
  0xfa   : > { %v3165_v17 = vpop.f32.mrf.mxu3  ;;  %v953_v18 = vpop.f32.mrf.mxu2 }
  0xfb   : > { %v877_v19 = vpop.f32.mrf.mxu0  ;;  %v3169_v24 = vpop.f32.mrf.mxu1  ;;  %v986_v56 = vadd.f32 %v953_v18, %v828_v52 }
  0xfc   : > { %v911_v48 = vadd.f32 %v877_v19, %v753_v43  ;;  %v910_v19 = vadd.f32 %v900_v16, %v752_v8  ;;  %v912_v63 = vadd.f32 %v3169_v24, %v754_v34  ;;  %v1318_v8 = vld [vmem:[#allocation9 + $0x68] sm:$0xff] }
 0x102   : > { %v3167_v20 = vpop.f32.mrf.mxu3  ;;  %v1105_v21 = vpop.f32.mrf.mxu2 }
 0x103   : > { %v880_v22 = vpop.f32.mrf.mxu0  ;;  %v1140_v28 = vadd.f32 %v1105_v21, %v982_v26  ;;  %v3174_v40 = vpop.f32.mrf.mxu1 }
 0x104   : > { %v913_v1 = vadd.f32 %v880_v22, %v755_v59  ;;  %v1149_v22 = vperm.slane %v1146_v25, 1  ;;  %v1229_v25 = vshrl.u32 %v1228_v2, 7 }
 0x105   : > { %v1164_v36 = vadd.f32 %v1148_v29, %v1140_v28 }
 0x107   : > { %v1170_v44 = vmax.f32 %v1164_v36, 0.0 }
 0x10a   : > { %v973_v31 = vpop.f32.mrf.mxu3  ;;  %v1108_v32 = vpop.f32.mrf.mxu2 }
 0x10b   : > { %v1032_v33 = vpop.f32.mrf.mxu0  ;;  %v1142_v46 = vadd.f32 %v1108_v32, %v984_v39  ;;  %v1058_v37 = vpop.f32.mrf.mxu1  ;;  %v983_v45 = vadd.f32 %v973_v31, %v825_v11  ;;  %v1370_v11 = vld [vmem:[#allocation9 + $0x120] sm:$0xff] }
 0x10c   : > { %v1067_v38 = vadd.f32 %v1032_v33, %v909_v30  ;;  %v1068_v23 = vadd.f32 %v1058_v37, %v910_v19  ;;  %v1372_v19 = vld [vmem:[#allocation9 + $0x130] sm:$0xff] }
 0x10d   : > { %v1166_v53 = vadd.f32 %v1148_v29, %v1142_v46 }
 0x10e   : > { %v1152_v41 = vadd.f32 %v1148_v29, %v1067_v38  ;;  %v1153_v16 = vadd.f32 %v1149_v22, %v1068_v23  ;;  %v827_v38 = vadd.f32 %v3165_v17, %v3157_v4 }
 0x10f   : > { %v1172_v61 = vmax.f32 %v1166_v53, 0.0 }
 0x110   : > { %v1158_v47 = vmax.f32 %v1152_v41, 0.0  ;;  %v1159_v39 = vmax.f32 %v1153_v16, 0.0 }
 0x112   : > { %v3177_v35 = vmax.f32 %v1158_v47, %v1170_v44  ;;  %v976_v49 = vpop.f32.mrf.mxu3  ;;  %v1111_v55 = vpop.f32.mrf.mxu2  ;;  %v1233_v47 = vmul.u32 2, %v1229_v25 }
 0x113   : > { %v1035_v50 = vpop.f32.mrf.mxu0  ;;  %v1144_v62 = vadd.f32 %v1111_v55, %v986_v56  ;;  %v1061_v30 = vpop.f32.mrf.mxu1  ;;  %v985_v46 = vadd.f32 %v976_v49, %v827_v38  ;;  %v1230_v55 = vadd.s32 8, %v1229_v25  ;;  %v829_v49 = vadd.f32 %v3167_v20, %v3161_v9  ;;  %v1320_v9 = vld [vmem:[#allocation9 + $0x78] sm:$0xff]  ;;  %v1319_v20 = vld [vmem:[#allocation9 + $0x70] sm:$0xff] }
 0x114   : > { %1182 = vst [vmem:[#allocation2] sm:$0xff] %v3177_v35  ;;  %v1069_v54 = vadd.f32 %v1035_v50, %v911_v48  ;;  %v1070_v41 = vadd.f32 %v1061_v30, %v912_v63  ;;  %v756_v48 = vadd.f32 %v3163_v12, %v3153_v57  ;;  %vm1235_vm4 = vcmp.eq.s32.totalorder %v1232_v7, %v1233_v47  ;;  %v1368_v30 = vld [vmem:[#allocation9 + $0x110] sm:$0xff]  ;;  %v1381_v25 = vld [vmem:[#allocation9 + $0x178] sm:$0xff] }
 0x115   : > { %v1168_v10 = vadd.f32 %v1148_v29, %v1144_v62  ;;  %v1234_v37 = vmul.u32 2, %v1230_v55  ;;  %1423 = vmatpush.msra.mxu3 %v1381_v25  ;;  %v1328_v47 = vld [vmem:[#allocation9 + $0xb8] sm:$0xff]  ;;  %v1500_v25 = vld [vmem:[#allocation11 + $0x168] sm:$0xff] }
 0x116   : > { %v1154_v58 = vadd.f32 %v1148_v29, %v1069_v54  ;;  %v914_v17 = vadd.f32 %v3174_v40, %v756_v48  ;;  %v1364_v48 = vld [vmem:[#allocation9 + $0xf0] sm:$0xff]  ;;  %v1324_v55 = vld [vmem:[#allocation9 + $0x98] sm:$0xff] }
 0x117   : > { %v1174_v27 = vmax.f32 %v1168_v10, 0.0  ;;  %vm1236_vm6 = vcmp.eq.s32.totalorder %v1232_v7, %v1234_v37  ;;  %v1309_v7 = vld [vmem:[#allocation9 + $0x20] sm:$0xff]  ;;  %v1597_v37 = vld [vmem:[#allocation9 + $0x1c8] sm:$0xff] }
 0x118   : > { %v1160_v0 = vmax.f32 %v1154_v58, 0.0  ;;  %v2743_v58 = vmov 0.0  }
 0x119   : > { %v3200_v59 = vsel %vm1235_vm4, 1.0, %v2743_v58 }
 0x11a   : > { %v1178_v3 = vmax.f32 %v1160_v0, %v1172_v61  ;;  %v3181_v6 = vpop.f32.mrf.mxu3 }
 0x11b   : > { %v1038_v60 = vpop.f32.mrf.mxu0  ;;  %v1195_v5 = vld [vmem:[#allocation2] sm:$0xfe]  ;;  %v1064_v52 = vpop.f32.mrf.mxu1  ;;  %v987_v40 = vadd.f32 %v3181_v6, %v829_v49  ;;  %v3206_v6 = vsel %vm1236_vm6, 1.0, %v2743_v58  ;;  %v1602_v49 = vld [vmem:[#allocation9 + $0x1f0] sm:$0xff] }
 0x11c   : > { %v1071_v14 = vadd.f32 %v1038_v60, %v913_v1  ;;  %v1207_v15 = vrot.slane %v1178_v3, 1  ;;  %v1206_v18 = vrot.slane %v1195_v5, 1  ;;  %v1072_v57 = vadd.f32 %v1064_v52, %v914_v17  ;;  %v1306_v17 = vld [vmem:[#allocation9 + $0x8] sm:$0xff]  ;;  %v1325_v52 = vld [vmem:[#allocation9 + $0xa0] sm:$0xff] }
 0x11d   : > { %v1600_v58 = vld [vmem:[#allocation9 + $0x1e0] sm:$0xff] }
 0x11e   : > { %v1156_v21 = vadd.f32 %v1148_v29, %v1071_v14  ;;  %v1208_v42 = vsel %vm1205_vm2, %v1206_v18, %v1207_v15  ;;  %v1157_v0 = vadd.f32 %v1149_v22, %v1072_v57  ;;  %v1317_v14 = vld [vmem:[#allocation9 + $0x60] sm:$0xff]  ;;  %v1316_v18 = vld [vmem:[#allocation9 + $0x58] sm:$0xff]  ;;  %v1601_v57 = vld [vmem:[#allocation9 + $0x1e8] sm:$0xff] }
 0x11f   : > { %v1222_v26 = vmax.f32 %v3177_v35, %v1208_v42  ;;  %v1155_v35 = vadd.f32 %v1149_v22, %v1070_v41  ;;  %v1315_v42 = vld [vmem:[#allocation9 + $0x50] sm:$0xff]  ;;  %v1310_v41 = vld [vmem:[#allocation9 + $0x28] sm:$0xff] }
 0x120   : > { %v1162_v28 = vmax.f32 %v1156_v21, 0.0  ;;  %v1163_v60 = vmax.f32 %v1157_v0, 0.0  ;;  %v1371_v21 = vld [vmem:[#allocation9 + $0x128] sm:$0xff]  ;;  %v1595_v0 = vld [vmem:[#allocation9 + $0x1b8] sm:$0xff] }
 0x121   : > { %v1161_v56 = vmax.f32 %v1155_v35, 0.0  ;;  %v1327_v35 = vld [vmem:[#allocation9 + $0xb0] sm:$0xff] }
 0x122   : > { %v1180_v32 = vmax.f32 %v1162_v28, %v1174_v27  ;;  %v1131_v33 = vpop.f32.mrf.mxu3  ;;  %v1313_v28 = vld [vmem:[#allocation9 + $0x40] sm:$0xff] }
 0x123   : > { %v1141_v29 = vadd.f32 %v1131_v33, %v983_v45  ;;  %v1312_v33 = vld [vmem:[#allocation9 + $0x38] sm:$0xff] }
 0x124   : > { %1187 = vst [vmem:[#allocation2 + $0x20] sm:$0xff] %v1180_v32  ;;  %v1212_v36 = vrot.slane %v1180_v32, 1 }
 0x125   : > { %v1165_v13 = vadd.f32 %v1149_v22, %v1141_v29  ;;  %v1367_v29 = vld [vmem:[#allocation9 + $0x108] sm:$0xff] }
 0x126   : > { %v1213_v31 = vsel %vm1205_vm2, %v1207_v15, %v1212_v36  ;;  %v1373_v15 = vld [vmem:[#allocation9 + $0x138] sm:$0xff] }
 0x127   : > { %v1171_v43 = vmax.f32 %v1165_v13, 0.0  ;;  %v1224_v44 = vmax.f32 %v1178_v3, %v1213_v31  ;;  %1395 = vmatpush.msrb.mxu2 %v1373_v15  ;;  %v1311_v13 = vld [vmem:[#allocation9 + $0x30] sm:$0xff]  ;;  %v1377_v15 = vld [vmem:[#allocation9 + $0x158] sm:$0xff] }
 0x129   : > { %v1177_v51 = vmax.f32 %v1159_v39, %v1171_v43  ;;  %1396 = vmatpush.msrb.mxu2 %v1372_v19  ;;  %v1366_v39 = vld [vmem:[#allocation9 + $0x100] sm:$0xff]  ;;  %v1380_v43 = vld [vmem:[#allocation9 + $0x170] sm:$0xff] }
 0x12a   : > { %v1134_v24 = vpop.f32.mrf.mxu3  ;;  %1424 = vmatpush.msra.mxu3 %v1380_v43  ;;  %v1590_v19 = vld [vmem:[#allocation9 + $0x190] sm:$0xff]  ;;  %v1490_v43 = vld [vmem:[#allocation11 + $0x118] sm:$0xff] }
 0x12b   : > { %1184 = vst.msk [vmem:[#allocation2 + $0x8] sm:$0xff] %vm1183_vm3, %v1177_v51  ;;  %v1143_v50 = vadd.f32 %v1134_v24, %v985_v46  ;;  %v1193_v4 = vld [vmem:[#allocation2 + $0x20] sm:$0x7f]  ;;  %1397 = vmatpush.msrb.mxu2 %v1371_v21  ;;  %v1365_v46 = vld [vmem:[#allocation9 + $0xf8] sm:$0xff] }
 0x12c   : > { %v1226_v53 = vmax.f32 %v1193_v4, %v1212_v36  ;;  %v1308_v24 = vld [vmem:[#allocation9 + $0x18] sm:$0xff]  ;;  %v1326_v4 = vld [vmem:[#allocation9 + $0xa8] sm:$0xff] }
 0x12d   : > { %v1167_v54 = vadd.f32 %v1149_v22, %v1143_v50  ;;  %1398 = vmatpush.msrb.mxu2 %v1370_v11  ;;  %v1307_v50 = vld [vmem:[#allocation9 + $0x10] sm:$0xff]  ;;  %v1361_v21 = vld [vmem:[#allocation9 + $0xd8] sm:$0xff]  ;;  %v1341_v11 = vld [vmem:[#allocation11 + $0x60] sm:$0xff] }
 0x12e   : > { %2427 = vmatpush.msk.msrb.mxu0 %vm1205_vm2, %v1226_v53  ;;  %v1305_v53 = vld [vmem:[#allocation9] sm:$0xff] }
 0x12f   : > { %v1173_v12 = vmax.f32 %v1167_v54, 0.0  ;;  %v1603_v54 = vld [vmem:[#allocation9 + $0x1f8] sm:$0xff] }
 0x130   : > { %1266 = vmatpush.msrb.mxu0 %v1224_v44 }
 0x131   : > { %v1179_v61 = vmax.f32 %v1161_v56, %v1173_v12  ;;  %v1323_v56 = vld [vmem:[#allocation9 + $0x90] sm:$0xff]  ;;  %v1322_v12 = vld [vmem:[#allocation9 + $0x88] sm:$0xff] }
 0x132   : > { %v1137_v62 = vpop.f32.mrf.mxu3  ;;  %1267 = vmatpush.msrb.mxu0 %v1222_v26  ;;  %v1369_v26 = vld [vmem:[#allocation9 + $0x118] sm:$0xff]  ;;  %v1196_v27 = vld [vmem:[#allocation2 + $0x8] sm:$0xfe] }
 0x133   : > { %1186 = vst.msk [vmem:[#allocation2 + $0x18] sm:$0xff] %vm1183_vm3, %v1179_v61  ;;  %v1145_v1 = vadd.f32 %v1137_v62, %v987_v40  ;;  %2428 = vmatmul.msk.f32.vlgmr.msrb.gmra.mxu0 %vm1239_vm5, %v3200_v59  ;;  %1399 = vmatpush.msrb.mxu2 %v1369_v26  ;;  %v1209_v16 = vrot.slane %v1196_v27, 1  ;;  %v1190_v44 = vld [vmem:[#allocation2 + $0x8] sm:$0xff]  ;;  %v1599_v40 = vld [vmem:[#allocation9 + $0x1d8] sm:$0xff]  ;;  %v1598_v61 = vld [vmem:[#allocation9 + $0x1d0] sm:$0xff] }
 0x134   : > { %1438 = vmatpush.msra.mxu0 %v1320_v9  ;;  %v1596_v62 = vld [vmem:[#allocation9 + $0x1c0] sm:$0xff]  ;;  %v1593_v9 = vld [vmem:[#allocation9 + $0x1a8] sm:$0xff] }
 0x135   : > { %v1169_v3 = vadd.f32 %v1149_v22, %v1145_v1  ;;  %v1314_v22 = vld [vmem:[#allocation9 + $0x48] sm:$0xff]  ;;  %1400 = vmatpush.msrb.mxu2 %v1368_v30  ;;  %v1594_v1 = vld [vmem:[#allocation9 + $0x1b0] sm:$0xff]  ;;  %v1588_v26 = vld [vmem:[#allocation9 + $0x180] sm:$0xff] }
 0x136   : > { %1439 = vmatpush.msra.mxu0 %v1319_v20  ;;  %v1592_v20 = vld [vmem:[#allocation9 + $0x1a0] sm:$0xff]  ;;  %v1375_v27 = vld [vmem:[#allocation9 + $0x148] sm:$0xff]  ;;  %v1339_v30 = vld [vmem:[#allocation11 + $0x50] sm:$0xff] }
 0x137   : > { %v1175_v5 = vmax.f32 %v1169_v3, 0.0  ;;  %1401 = vmatpush.msrb.mxu2 %v1367_v29  ;;  %v1591_v3 = vld [vmem:[#allocation9 + $0x198] sm:$0xff]  ;;  %v1493_v29 = vld [vmem:[#allocation11 + $0x130] sm:$0xff] }
 0x138   : > { %1440 = vmatpush.msra.mxu0 %v1318_v8  ;;  %v1379_v8 = vld [vmem:[#allocation9 + $0x168] sm:$0xff] }
 0x139   : > { %v1181_v10 = vmax.f32 %v1163_v60, %v1175_v5  ;;  %1402 = vmatpush.msrb.mxu2 %v1366_v39  ;;  %v1344_v60 = vld [vmem:[#allocation11 + $0x78] sm:$0xff]  ;;  %v1363_v5 = vld [vmem:[#allocation9 + $0xe8] sm:$0xff]  ;;  %1425 = vmatpush.msra.mxu3 %v1379_v8  ;;  %v1499_v39 = vld [vmem:[#allocation11 + $0x160] sm:$0xff] }
 0x13a   : > { %1441 = vmatpush.msra.mxu0 %v1317_v14  ;;  %v1192_v23 = vld [vmem:[#allocation2 + $0x18] sm:$0xff]  ;;  %v1362_v14 = vld [vmem:[#allocation9 + $0xe0] sm:$0xff] }
 0x13b   : > { %1188 = vst.msk [vmem:[#allocation2 + $0x28] sm:$0xff] %vm1183_vm3, %v1181_v10  ;;  %2429 = vmatmul.msk.f32.gmra.mxu0 %vm1239_vm5, %v3206_v6  ;;  %v1210_v2 = vrot.slane %v1192_v23, 1  ;;  %1403 = vmatpush.msrb.mxu2 %v1365_v46  ;;  %v1343_v10 = vld [vmem:[#allocation11 + $0x70] sm:$0xff]  ;;  %v1334_v46 = vld [vmem:[#allocation11 + $0x28] sm:$0xff] }
 0x13c   : > { %1442 = vmatpush.msra.mxu0 %v1316_v18  ;;  %v1342_v18 = vld [vmem:[#allocation11 + $0x68] sm:$0xff] }
 0x13d   : > { %v1211_v31 = vsel %vm1205_vm2, %v1209_v16, %v1210_v2  ;;  %1404 = vmatpush.msrb.mxu2 %v1364_v48  ;;  %v1338_v16 = vld [vmem:[#allocation11 + $0x48] sm:$0xff] }
 0x13e   : > { %1443 = vmatpush.msra.mxu0 %v1315_v42  ;;  %v1223_v51 = vmax.f32 %v1190_v44, %v1211_v31  ;;  %v1376_v42 = vld [vmem:[#allocation9 + $0x150] sm:$0xff]  ;;  %v1491_v31 = vld [vmem:[#allocation11 + $0x120] sm:$0xff]  ;;  %v1498_v44 = vld [vmem:[#allocation11 + $0x158] sm:$0xff] }
 0x13f   : > { %1405 = vmatpush.msrb.mxu2 %v1363_v5  ;;  %v1488_v48 = vld [vmem:[#allocation11 + $0x108] sm:$0xff]  ;;  %v1754_v5 = vld [vmem:[#allocation9 + $0x2c0] sm:$0xff] }
 0x140   : > { %1444 = vmatpush.msra.mxu0 %v1314_v22  ;;  %v1360_v22 = vld [vmem:[#allocation9 + $0xd0] sm:$0xff] }
 0x141   : > { %1406 = vmatpush.msrb.mxu2 %v1362_v14 }
 0x142   : > { %v1198_v45 = vld [vmem:[#allocation2 + $0x28] sm:$0xff]  ;;  %1445 = vmatpush.msra.mxu0 %v1313_v28  ;;  %v1340_v28 = vld [vmem:[#allocation11 + $0x58] sm:$0xff] }
 0x143   : > { %v1214_v32 = vrot.slane %v1198_v45, 1  ;;  %v1194_v34 = vld [vmem:[#allocation2 + $0x28] sm:$0x7f]  ;;  %1407 = vmatpush.msrb.mxu2 %v1361_v21  ;;  %v1903_v21 = vld [vmem:[#allocation9 + $0x378] sm:$0xff] }
 0x144   : > { %1446 = vmatpush.msra.mxu0 %v1312_v33  ;;  %v1359_v45 = vld [vmem:[#allocation9 + $0xc8] sm:$0xff]  ;;  %v1494_v33 = vld [vmem:[#allocation11 + $0x138] sm:$0xff] }
 0x145   : > { %v1227_v36 = vmax.f32 %v1194_v34, %v1214_v32  ;;  %v1215_v63 = vsel %vm1205_vm2, %v1210_v2, %v1214_v32  ;;  %1408 = vmatpush.msrb.mxu2 %v1360_v22  ;;  %v1374_v2 = vld [vmem:[#allocation9 + $0x140] sm:$0xff]  ;;  %v1502_v34 = vld [vmem:[#allocation11 + $0x178] sm:$0xff]  ;;  %v1902_v22 = vld [vmem:[#allocation9 + $0x370] sm:$0xff] }
 0x146   : > { %v1225_v38 = vmax.f32 %v1192_v23, %v1215_v63  ;;  %1447 = vmatpush.msra.mxu0 %v1311_v13  ;;  %v1589_v23 = vld [vmem:[#allocation9 + $0x188] sm:$0xff]  ;;  %v1358_v32 = vld [vmem:[#allocation9 + $0xc0] sm:$0xff] }
 0x147   : > { %2430 = vmatpush.msk.msrb.mxu1 %vm1205_vm2, %v1227_v36  ;;  %1409 = vmatpush.msrb.mxu2 %v1359_v45  ;;  %v1501_v36 = vld [vmem:[#allocation11 + $0x170] sm:$0xff]  ;;  %v1337_v63 = vld [vmem:[#allocation11 + $0x40] sm:$0xff]  ;;  %v1492_v13 = vld [vmem:[#allocation11 + $0x128] sm:$0xff] }
 0x148   : > { %1448 = vmatpush.msra.mxu0 %v1310_v41  ;;  %v1335_v41 = vld [vmem:[#allocation11 + $0x30] sm:$0xff]  ;;  %v1900_v45 = vld [vmem:[#allocation9 + $0x360] sm:$0xff] }
 0x149   : > { %1289 = vmatpush.msrb.mxu1 %v1225_v38  ;;  %1410 = vmatpush.msrb.mxu2 %v1358_v32  ;;  %v1336_v38 = vld [vmem:[#allocation11 + $0x38] sm:$0xff] }
 0x14a   : > { %1449 = vmatpush.msra.mxu0 %v1309_v7  ;;  %v1497_v7 = vld [vmem:[#allocation11 + $0x150] sm:$0xff]  ;;  %v1899_v32 = vld [vmem:[#allocation9 + $0x358] sm:$0xff] }
 0x14b   : > { %1290 = vmatpush.msrb.mxu1 %v1223_v51  ;;  %1531 = vmatpush.msra.mxu2 %v1502_v34  ;;  %v1489_v51 = vld [vmem:[#allocation11 + $0x110] sm:$0xff] }
 0x14c   : > { %2431 = vmatmul.msk.f32.vlgmr.msrb.gmra.mxu1 %vm1239_vm5, %v3200_v59  ;;  %1450 = vmatpush.msra.mxu0 %v1308_v24  ;;  %v1321_v59 = vld [vmem:[#allocation9 + $0x80] sm:$0xff]  ;;  %v1496_v24 = vld [vmem:[#allocation11 + $0x148] sm:$0xff]  ;;  %v1898_v34 = vld [vmem:[#allocation9 + $0x350] sm:$0xff] }
 0x14d   : > { %1466 = vmatpush.msra.mxu1 %v1328_v47  ;;  %1532 = vmatpush.msra.mxu2 %v1501_v36  ;;  %v1333_v47 = vld [vmem:[#allocation11 + $0x20] sm:$0xff]  ;;  %v1346_v36 = vld [vmem:[#allocation11 + $0x88] sm:$0xff] }
 0x14e   : > { %1451 = vmatpush.msra.mxu0 %v1307_v50  ;;  %v1487_v50 = vld [vmem:[#allocation11 + $0x100] sm:$0xff] }
 0x14f   : > { %1467 = vmatpush.msra.mxu1 %v1327_v35  ;;  %1533 = vmatpush.msra.mxu2 %v1500_v25  ;;  %v1332_v35 = vld [vmem:[#allocation11 + $0x18] sm:$0xff] }
 0x150   : > { %1452 = vmatpush.msra.mxu0 %v1306_v17  ;;  %v1331_v17 = vld [vmem:[#allocation11 + $0x10] sm:$0xff] }
 0x151   : > { %1468 = vmatpush.msra.mxu1 %v1326_v4  ;;  %1534 = vmatpush.msra.mxu2 %v1499_v39  ;;  %v1495_v4 = vld [vmem:[#allocation11 + $0x140] sm:$0xff]  ;;  %v1690_v39 = vld [vmem:[#allocation11 + $0x230] sm:$0xff] }
 0x152   : > { %1453 = vmatpush.msra.mxu0 %v1305_v53  ;;  %v1330_v53 = vld [vmem:[#allocation11 + $0x8] sm:$0xff] }
 0x153   : > { %1469 = vmatpush.msra.mxu1 %v1325_v52  ;;  %1535 = vmatpush.msra.mxu2 %v1498_v44  ;;  %v1486_v52 = vld [vmem:[#allocation11 + $0xf8] sm:$0xff]  ;;  %v1894_v44 = vld [vmem:[#allocation9 + $0x330] sm:$0xff] }
 0x154   : > { %2432 = vmatmul.msk.f32.gmra.mxu1 %vm1239_vm5, %v3206_v6  ;;  %1626 = vmatpush.msrb.mxu0 %v1603_v54  ;;  %v1378_v6 = vld [vmem:[#allocation9 + $0x160] sm:$0xff]  ;;  %v1485_v54 = vld [vmem:[#allocation11 + $0xf0] sm:$0xff] }
 0x155   : > { %1470 = vmatpush.msra.mxu1 %v1324_v55  ;;  %1426 = vmatpush.msra.mxu3 %v1378_v6  ;;  %v1761_v55 = vld [vmem:[#allocation9 + $0x2f8] sm:$0xff] }
 0x156   : > { %1627 = vmatpush.msrb.mxu0 %v1602_v49  ;;  %1536 = vmatpush.msra.mxu2 %v1497_v7 }
 0x157   : > { %1471 = vmatpush.msra.mxu1 %v1323_v56  ;;  %1427 = vmatpush.msra.mxu3 %v1377_v15  ;;  %v1760_v56 = vld [vmem:[#allocation9 + $0x2f0] sm:$0xff] }
 0x158   : > { %1628 = vmatpush.msrb.mxu0 %v1601_v57  ;;  %1537 = vmatpush.msra.mxu2 %v1496_v24  ;;  %v1329_v57 = vld [vmem:[#allocation11] sm:$0xff] }
 0x159   : > { %1472 = vmatpush.msra.mxu1 %v1322_v12  ;;  %1428 = vmatpush.msra.mxu3 %v1376_v42  ;;  %v1484_v12 = vld [vmem:[#allocation11 + $0xe8] sm:$0xff]  ;;  %v1352_v42 = vld [vmem:[#allocation11 + $0xb8] sm:$0xff]  ;;  %v1892_v24 = vld [vmem:[#allocation9 + $0x320] sm:$0xff] }
 0x15a   : > { %1629 = vmatpush.msrb.mxu0 %v1600_v58  ;;  %1538 = vmatpush.msra.mxu2 %v1495_v4  ;;  %v1759_v58 = vld [vmem:[#allocation9 + $0x2e8] sm:$0xff]  ;;  %v1686_v4 = vld [vmem:[#allocation11 + $0x210] sm:$0xff] }
 0x15b   : > { %1473 = vmatpush.msra.mxu1 %v1321_v59  ;;  %1429 = vmatpush.msra.mxu3 %v1375_v27  ;;  %v1483_v59 = vld [vmem:[#allocation11 + $0xe0] sm:$0xff]  ;;  %v1901_v27 = vld [vmem:[#allocation9 + $0x368] sm:$0xff] }
 0x15c   : > { %1630 = vmatpush.msrb.mxu0 %v1599_v40  ;;  %v1758_v40 = vld [vmem:[#allocation9 + $0x2e0] sm:$0xff] }
 0x15d   : > { %1543 = vmatpush.msrb.mxu1 %v1344_v60  ;;  %1430 = vmatpush.msra.mxu3 %v1374_v2  ;;  %v1349_v2 = vld [vmem:[#allocation11 + $0xa0] sm:$0xff] }
 0x15e   : > { %1631 = vmatpush.msrb.mxu0 %v1598_v61  ;;  %v1482_v61 = vld [vmem:[#allocation11 + $0xd8] sm:$0xff] }
 0x15f   : > { %1544 = vmatpush.msrb.mxu1 %v1343_v10  ;;  %1503 = vmatpush.msrb.mxu3 %v1494_v33  ;;  %v1348_v33 = vld [vmem:[#allocation11 + $0x98] sm:$0xff] }
 0x160   : > { %1632 = vmatpush.msrb.mxu0 %v1597_v37  ;;  %v1757_v37 = vld [vmem:[#allocation9 + $0x2d8] sm:$0xff] }
 0x161   : > { %1545 = vmatpush.msrb.mxu1 %v1342_v18  ;;  %1504 = vmatpush.msrb.mxu3 %v1493_v29  ;;  %v1897_v29 = vld [vmem:[#allocation9 + $0x348] sm:$0xff] }
 0x162   : > { %1633 = vmatpush.msrb.mxu0 %v1596_v62  ;;  %v1481_v62 = vld [vmem:[#allocation11 + $0xd0] sm:$0xff] }
 0x163   : > { %1546 = vmatpush.msrb.mxu1 %v1341_v11  ;;  %1505 = vmatpush.msrb.mxu3 %v1492_v13  ;;  %v1896_v13 = vld [vmem:[#allocation9 + $0x340] sm:$0xff] }
 0x164   : > { %1634 = vmatpush.msrb.mxu0 %v1595_v0 }
 0x165   : > { %1547 = vmatpush.msrb.mxu1 %v1340_v28  ;;  %1506 = vmatpush.msrb.mxu3 %v1491_v31  ;;  %v1350_v28 = vld [vmem:[#allocation11 + $0xa8] sm:$0xff]  ;;  %v1345_v31 = vld [vmem:[#allocation11 + $0x80] sm:$0xff] }
 0x166   : > { %1635 = vmatpush.msrb.mxu0 %v1594_v1  ;;  %v1756_v1 = vld [vmem:[#allocation9 + $0x2d0] sm:$0xff] }
 0x167   : > { %1548 = vmatpush.msrb.mxu1 %v1339_v30  ;;  %1507 = vmatpush.msrb.mxu3 %v1490_v43  ;;  %v1689_v43 = vld [vmem:[#allocation11 + $0x228] sm:$0xff] }
 0x168   : > { %1636 = vmatpush.msrb.mxu0 %v1593_v9  ;;  %v1480_v9 = vld [vmem:[#allocation11 + $0xc8] sm:$0xff] }
 0x169   : > { %1549 = vmatpush.msrb.mxu1 %v1338_v16  ;;  %1508 = vmatpush.msrb.mxu3 %v1489_v51  ;;  %v1347_v16 = vld [vmem:[#allocation11 + $0x90] sm:$0xff]  ;;  %v1893_v51 = vld [vmem:[#allocation9 + $0x328] sm:$0xff] }
 0x16a   : > { %1637 = vmatpush.msrb.mxu0 %v1592_v20  ;;  %v1755_v20 = vld [vmem:[#allocation9 + $0x2c8] sm:$0xff] }
 0x16b   : > { %1550 = vmatpush.msrb.mxu1 %v1337_v63  ;;  %1509 = vmatpush.msrb.mxu3 %v1488_v48  ;;  %v1691_v63 = vld [vmem:[#allocation11 + $0x238] sm:$0xff] }
 0x16c   : > { %1638 = vmatpush.msrb.mxu0 %v1591_v3  ;;  %v1479_v3 = vld [vmem:[#allocation11 + $0xc0] sm:$0xff]  ;;  %v1687_v48 = vld [vmem:[#allocation11 + $0x218] sm:$0xff] }
 0x16d   : > { %1551 = vmatpush.msrb.mxu1 %v1336_v38  ;;  %1510 = vmatpush.msrb.mxu3 %v1487_v50 }
 0x16e   : > { %1639 = vmatpush.msrb.mxu0 %v1590_v19 }
 0x16f   : > { %1552 = vmatpush.msrb.mxu1 %v1335_v41  ;;  %1511 = vmatpush.msrb.mxu3 %v1486_v52  ;;  %v1895_v41 = vld [vmem:[#allocation9 + $0x338] sm:$0xff] }
 0x170   : > { %1640 = vmatpush.msrb.mxu0 %v1589_v23 }
 0x171   : > { %1553 = vmatpush.msrb.mxu1 %v1334_v46  ;;  %1512 = vmatpush.msrb.mxu3 %v1485_v54  ;;  %v1688_v46 = vld [vmem:[#allocation11 + $0x220] sm:$0xff] }
 0x172   : > { %1641 = vmatpush.msrb.mxu0 %v1588_v26  ;;  %v1351_v26 = vld [vmem:[#allocation11 + $0xb0] sm:$0xff] }
 0x173   : > { %1554 = vmatpush.msrb.mxu1 %v1333_v47  ;;  %1513 = vmatpush.msrb.mxu3 %v1484_v12 }
 0x175   : > { %1555 = vmatpush.msrb.mxu1 %v1332_v35  ;;  %1514 = vmatpush.msrb.mxu3 %v1483_v59  ;;  %v1610_v59 = vld [vmem:[#allocation9 + $0x230] sm:$0xff] }
 0x177   : > { %1556 = vmatpush.msrb.mxu1 %v1331_v17  ;;  %1515 = vmatpush.msrb.mxu3 %v1482_v61 }
 0x179   : > { %1557 = vmatpush.msrb.mxu1 %v1330_v53  ;;  %1516 = vmatpush.msrb.mxu3 %v1481_v62  ;;  %v1684_v62 = vld [vmem:[#allocation11 + $0x200] sm:$0xff] }
 0x17b   : > { %1558 = vmatpush.msrb.mxu1 %v1329_v57  ;;  %1517 = vmatpush.msrb.mxu3 %v1480_v9  ;;  %v1683_v57 = vld [vmem:[#allocation11 + $0x1f8] sm:$0xff]  ;;  %v1681_v9 = vld [vmem:[#allocation11 + $0x1e8] sm:$0xff] }
 0x17d   : > { %1518 = vmatpush.msrb.mxu3 %v1479_v3 }
 0x1b0   : > { %v3218_v49 = vpop.f32.mrf.mxu0 }
 0x1b1   : > { %1298 = vst [vmem:[#allocation3] sm:$0xff] %v3218_v49  ;;  %1454 = vmatmul.f32.vlgmr.msra.gmra.mxu0 %v3218_v49 }
 0x1b2   : > { %1804 = vmatpush.msra.mxu0 %v1761_v55  ;;  %v1611_v55 = vld [vmem:[#allocation9 + $0x238] sm:$0xff] }
 0x1b4   : > { %1805 = vmatpush.msra.mxu0 %v1760_v56 }
 0x1b6   : > { %1806 = vmatpush.msra.mxu0 %v1759_v58 }
 0x1b8   : > { %v1272_v0 = vpop.f32.mrf.mxu0  ;;  %1807 = vmatpush.msra.mxu0 %v1758_v40  ;;  %v1353_v8 = vld [vmem:[#allocation3] sm:$0xfe] }
 0x1b9   : > { %1300 = vst [vmem:[#allocation3 + $0x10] sm:$0xf] %v1272_v0  ;;  %v1583_v60 = vld [vmem:[#allocation3] sm:$0xfc]  ;;  %v1386_v6 = vrot.slane %v1353_v8, 1  ;;  %v1609_v0 = vld [vmem:[#allocation9 + $0x228] sm:$0xff] }
 0x1ba   : > { %1808 = vmatpush.msra.mxu0 %v1757_v37  ;;  %v1617_v10 = vrot.slane %v1583_v60, 2  ;;  %v1682_v40 = vld [vmem:[#allocation11 + $0x1f0] sm:$0xff]  ;;  %v1891_v37 = vld [vmem:[#allocation9 + $0x318] sm:$0xff]  ;;  %v1608_v8 = vld [vmem:[#allocation9 + $0x220] sm:$0xff] }
 0x1bb   : > { %v1680_v60 = vld [vmem:[#allocation11 + $0x1e0] sm:$0xff] }
 0x1bc   : > { %1809 = vmatpush.msra.mxu0 %v1756_v1 }
 0x1be   : > { %1810 = vmatpush.msra.mxu0 %v1755_v20  ;;  %v1833_v20 = vld [vmem:[#allocation11 + $0x2b8] sm:$0xff] }
 0x1c0   : > { %1811 = vmatpush.msra.mxu0 %v1754_v5  ;;  %v1355_v14 = vld [vmem:[#allocation3 + $0x10] sm:$0x1]  ;;  %v1832_v5 = vld [vmem:[#allocation11 + $0x2b0] sm:$0xff] }
 0x1c1   : > { %v1585_v15 = vld [vmem:[#allocation3 + $0x10] sm:$0x3]  ;;  %v1387_v18 = vrot.slane %v1355_v14, 1  ;;  %v1679_v14 = vld [vmem:[#allocation11 + $0x1d8] sm:$0xff] }
 0x1c2   : > { %v1618_v19 = vrot.slane %v1585_v15, 2  ;;  %v1883_v15 = vld [vmem:[#allocation3] sm:$0xf0] }
 0x1c3   : > { %v3223_v11 = vsel %vm1205_vm2, %v1386_v6, %v1387_v18  ;;  %v1831_v18 = vld [vmem:[#allocation11 + $0x2a8] sm:$0xff] }
 0x1c4   : > { %v3226_v23 = vsel %vm1616_vm7, %v1617_v10, %v1618_v19  ;;  %1411 = vmatmul.f32.vlgmr.msrb.gmra.mxu2 %v3223_v11  ;;  %v1607_v10 = vld [vmem:[#allocation9 + $0x218] sm:$0xff]  ;;  %v1890_v19 = vld [vmem:[#allocation9 + $0x310] sm:$0xff] }
 0x1c5   : > { %1642 = vmatmul.f32.vlgmr.msrb.gmra.mxu0 %v3226_v23  ;;  %1571 = vmatpush.msrb.mxu2 %v1352_v42  ;;  %v1606_v42 = vld [vmem:[#allocation9 + $0x210] sm:$0xff] }
 0x1c6   : > { %1925 = vmatpush.msrb.mxu0 %v1903_v21  ;;  %v1885_v21 = vld [vmem:[#allocation3 + $0x10] sm:$0xf] }
 0x1c7   : > { %1572 = vmatpush.msrb.mxu2 %v1351_v26  ;;  %v1830_v26 = vld [vmem:[#allocation11 + $0x2a0] sm:$0xff] }
 0x1c8   : > { %1926 = vmatpush.msrb.mxu0 %v1902_v22  ;;  %v1678_v22 = vld [vmem:[#allocation11 + $0x1d0] sm:$0xff] }
 0x1c9   : > { %v1292_v30 = vpop.f32.mrf.mxu1  ;;  %1573 = vmatpush.msrb.mxu2 %v1350_v28  ;;  %v1605_v28 = vld [vmem:[#allocation9 + $0x208] sm:$0xff] }
 0x1ca   : > { %1927 = vmatpush.msrb.mxu0 %v1901_v27  ;;  %1299 = vst.msk [vmem:[#allocation3 + $0x8] sm:$0xff] %vm1183_vm3, %v1292_v30  ;;  %v1889_v27 = vld [vmem:[#allocation9 + $0x308] sm:$0xff]  ;;  %v1917_v30 = vrot.slane %v1885_v21, 4 }
 0x1cb   : > { %1574 = vmatpush.msrb.mxu2 %v1349_v2  ;;  %v1916_v2 = vrot.slane %v1883_v15, 4  ;;  %v1836_v15 = vld [vmem:[#allocation11 + $0x2d0] sm:$0xff]  ;;  %v1835_v21 = vld [vmem:[#allocation11 + $0x2c8] sm:$0xff] }
 0x1cc   : > { %1928 = vmatpush.msrb.mxu0 %v1900_v45  ;;  %v1677_v45 = vld [vmem:[#allocation11 + $0x1c8] sm:$0xff] }
 0x1cd   : > { %1575 = vmatpush.msrb.mxu2 %v1348_v33  ;;  %v1888_v33 = vld [vmem:[#allocation9 + $0x300] sm:$0xff] }
 0x1ce   : > { %1929 = vmatpush.msrb.mxu0 %v1899_v32  ;;  %v1829_v32 = vld [vmem:[#allocation11 + $0x298] sm:$0xff] }
 0x1cf   : > { %1576 = vmatpush.msrb.mxu2 %v1347_v16  ;;  %v1828_v16 = vld [vmem:[#allocation11 + $0x290] sm:$0xff] }
 0x1d0   : > { %1930 = vmatpush.msrb.mxu0 %v1898_v34  ;;  %v1676_v34 = vld [vmem:[#allocation11 + $0x1c0] sm:$0xff] }
 0x1d1   : > { %v1295_v25 = vpop.f32.mrf.mxu1  ;;  %v3231_v38 = vld [vmem:[#allocation3 + $0x8] sm:$0xff]  ;;  %1577 = vmatpush.msrb.mxu2 %v1346_v36 }
 0x1d2   : > { %1931 = vmatpush.msrb.mxu0 %v1897_v29  ;;  %1302 = vst.msk [vmem:[#allocation3 + $0x18] sm:$0xf] %vm1301_vm8, %v1295_v25  ;;  %2434 = vmatmul.msk.f32.vlgmr.msra.gmra.mxu1 %vm1183_vm3, %v3231_v38  ;;  %v1354_v7 = vld [vmem:[#allocation3 + $0x8] sm:$0xfe]  ;;  %v3250_v29 = vsel %vm421_vm0, %v1916_v2, %v1917_v30  ;;  %v1752_v25 = vld [vmem:[#allocation9 + $0x2b0] sm:$0xff]  ;;  %v1984_v30 = vld [vmem:[#allocation11 + $0x388] sm:$0xff] }
 0x1d3   : > { %1720 = vmatpush.msra.mxu1 %v1691_v63  ;;  %1578 = vmatpush.msrb.mxu2 %v1345_v31  ;;  %v1734_v47 = vld [vmem:[#allocation3 + $0x8] sm:$0xf8]  ;;  %v1389_v17 = vrot.slane %v1354_v7, 1  ;;  %v1826_v31 = vld [vmem:[#allocation11 + $0x280] sm:$0xff] }
 0x1d4   : > { %1932 = vmatpush.msrb.mxu0 %v1896_v13  ;;  %v1770_v53 = vrot.slane %v1734_v47, 3  ;;  %v1584_v61 = vld [vmem:[#allocation3 + $0x8] sm:$0xfc]  ;;  %v1827_v13 = vld [vmem:[#allocation11 + $0x288] sm:$0xff] }
 0x1d5   : > { %1721 = vmatpush.msra.mxu1 %v1690_v39  ;;  %v1620_v3 = vrot.slane %v1584_v61, 2  ;;  %v1753_v36 = vld [vmem:[#allocation9 + $0x2b8] sm:$0xff]  ;;  %v1751_v39 = vld [vmem:[#allocation9 + $0x2a8] sm:$0xff]  ;;  %v1840_v61 = vld [vmem:[#allocation11 + $0x2f0] sm:$0xff] }
 0x1d6   : > { %1933 = vmatpush.msrb.mxu0 %v1895_v41  ;;  %v1675_v63 = vld [vmem:[#allocation11 + $0x1b8] sm:$0xff]  ;;  %v1673_v41 = vld [vmem:[#allocation11 + $0x1a8] sm:$0xff] }
 0x1d7   : > { %1722 = vmatpush.msra.mxu1 %v1689_v43  ;;  %v1825_v43 = vld [vmem:[#allocation11 + $0x278] sm:$0xff] }
 0x1d8   : > { %1934 = vmatpush.msrb.mxu0 %v1894_v44  ;;  %v1750_v44 = vld [vmem:[#allocation9 + $0x2a0] sm:$0xff]  ;;  %v1749_v7 = vld [vmem:[#allocation9 + $0x298] sm:$0xff] }
 0x1d9   : > { %1723 = vmatpush.msra.mxu1 %v1688_v46  ;;  %v1356_v35 = vld [vmem:[#allocation3 + $0x18] sm:$0x1]  ;;  %v1672_v46 = vld [vmem:[#allocation11 + $0x1a0] sm:$0xff]  ;;  %v1671_v47 = vld [vmem:[#allocation11 + $0x198] sm:$0xff] }
 0x1da   : > { %v1736_v50 = vld [vmem:[#allocation3 + $0x18] sm:$0x7]  ;;  %1935 = vmatpush.msrb.mxu0 %v1893_v51  ;;  %1559 = vmatmul.f32.vlgmr.msrb.gmra.mxu1 %v3218_v49  ;;  %v1390_v52 = vrot.slane %v1356_v35, 1  ;;  %v1824_v51 = vld [vmem:[#allocation11 + $0x270] sm:$0xff] }
 0x1db   : > { %v1771_v54 = vrot.slane %v1736_v50, 3  ;;  %1724 = vmatpush.msra.mxu1 %v1687_v48  ;;  %v1586_v58 = vld [vmem:[#allocation3 + $0x18] sm:$0x3]  ;;  %v1670_v35 = vld [vmem:[#allocation11 + $0x190] sm:$0xff]  ;;  %v1822_v50 = vld [vmem:[#allocation11 + $0x260] sm:$0xff] }
 0x1dc   : > { %1936 = vmatpush.msrb.mxu0 %v1892_v24  ;;  %v1391_v56 = vsel %vm1205_vm2, %v1389_v17, %v1390_v52  ;;  %v1685_v49 = vld [vmem:[#allocation11 + $0x208] sm:$0xff]  ;;  %v1621_v1 = vrot.slane %v1586_v58, 2  ;;  %v1748_v24 = vld [vmem:[#allocation9 + $0x290] sm:$0xff]  ;;  %v1821_v52 = vld [vmem:[#allocation11 + $0x258] sm:$0xff] }
 0x1dd   : > { %v3238_v12 = vsel %vm1766_vm9, %v1770_v53, %v1771_v54  ;;  %1725 = vmatpush.msra.mxu1 %v1686_v4  ;;  %2433 = vmatmul.msk.f32.vlgmr.msra.gmra.mxu3 %vm1183_vm3, %v1391_v56  ;;  %v1823_v48 = vld [vmem:[#allocation11 + $0x268] sm:$0xff]  ;;  %v1746_v53 = vld [vmem:[#allocation9 + $0x280] sm:$0xff]  ;;  %v1745_v58 = vld [vmem:[#allocation9 + $0x278] sm:$0xff] }
 0x1de   : > { %2435 = vmatmul.msk.f32.vlgmr.msra.gmra.mxu2 %vm1183_vm3, %v1391_v56  ;;  %1654 = vmatpush.msra.mxu3 %v1611_v55  ;;  %v1622_v6 = vsel %vm1616_vm7, %v1620_v3, %v1621_v1  ;;  %v1747_v4 = vld [vmem:[#allocation9 + $0x288] sm:$0xff]  ;;  %v1668_v54 = vld [vmem:[#allocation11 + $0x180] sm:$0xff]  ;;  %v1820_v55 = vld [vmem:[#allocation11 + $0x250] sm:$0xff] }
 0x1df   : > { %1692 = vmatpush.msra.mxu2 %v1683_v57  ;;  %2439 = vmatmul.msk.f32.vlgmr.msra.gmra.mxu0 %vm1183_vm3, %v3238_v12  ;;  %v1669_v17 = vld [vmem:[#allocation11 + $0x188] sm:$0xff]  ;;  %v1733_v56 = vld [vmem:[#allocation3] sm:$0xf8]  ;;  %v1735_v57 = vld [vmem:[#allocation3 + $0x10] sm:$0x7] }
 0x1e0   : > { %1726 = vmatpush.msra.mxu1 %v1685_v49  ;;  %1655 = vmatpush.msra.mxu3 %v1610_v59  ;;  %v1841_v49 = vld [vmem:[#allocation11 + $0x2f8] sm:$0xff]  ;;  %v1819_v59 = vld [vmem:[#allocation11 + $0x248] sm:$0xff] }
 0x1e1   : > { %1693 = vmatpush.msra.mxu2 %v1682_v40  ;;  %1937 = vmatpush.msrb.mxu0 %v1891_v37  ;;  %v1744_v40 = vld [vmem:[#allocation9 + $0x270] sm:$0xff]  ;;  %v1767_v37 = vrot.slane %v1733_v56, 3  ;;  %v1743_v1 = vld [vmem:[#allocation9 + $0x268] sm:$0xff]  ;;  %v2458_v56 = vld [vmem:[%s3532_s7 + $0xf8] sm:$0xff] }
 0x1e2   : > { %1727 = vmatpush.msra.mxu1 %v1684_v62  ;;  %1656 = vmatpush.msra.mxu3 %v1609_v0  ;;  %v1768_v62 = vrot.slane %v1735_v57, 3  ;;  %v1818_v0 = vld [vmem:[#allocation11 + $0x240] sm:$0xff]  ;;  %v1886_v2 = vld [vmem:[#allocation3 + $0x18] sm:$0xf]  ;;  %v2474_v57 = vld [vmem:[%s3532_s7 + $0x178] sm:$0xff] }
 0x1e3   : > { %1694 = vmatpush.msra.mxu2 %v1681_v9  ;;  %2438 = vmatmul.msk.f32.vlgmr.msra.gmra.mxu1 %vm1183_vm3, %v1622_v6  ;;  %v1839_v9 = vld [vmem:[#allocation11 + $0x2e8] sm:$0xff] }
 0x1e4   : > { %1842 = vmatpush.msrb.mxu1 %v1833_v20  ;;  %1657 = vmatpush.msra.mxu3 %v1608_v8  ;;  %v1990_v20 = vld [vmem:[#allocation11 + $0x3b8] sm:$0xff]  ;;  %v1769_v3 = vsel %vm1766_vm9, %v1767_v37, %v1768_v62  ;;  %v1742_v8 = vld [vmem:[#allocation9 + $0x260] sm:$0xff]  ;;  %v2457_v37 = vld [vmem:[%s3532_s7 + $0xf0] sm:$0xff] }
 0x1e5   : > { %1695 = vmatpush.msra.mxu2 %v1680_v60  ;;  %1519 = vmatmul.f32.vlgmr.msrb.gmra.mxu3 %v3223_v11  ;;  %v1604_v11 = vld [vmem:[#allocation9 + $0x200] sm:$0xff]  ;;  %v1989_v60 = vld [vmem:[#allocation11 + $0x3b0] sm:$0xff] }
 0x1e6   : > { %1843 = vmatpush.msrb.mxu1 %v1832_v5  ;;  %2436 = vmatmul.msk.f32.vlgmr.msrb.gmra.mxu2 %vm1183_vm3, %v3231_v38  ;;  %v1674_v38 = vld [vmem:[#allocation11 + $0x1b0] sm:$0xff]  ;;  %v1741_v5 = vld [vmem:[#allocation9 + $0x258] sm:$0xff] }
 0x1e7   : > { %1658 = vmatpush.msra.mxu3 %v1607_v10  ;;  %1696 = vmatpush.msra.mxu2 %v1679_v14  ;;  %v1988_v10 = vld [vmem:[#allocation11 + $0x3a8] sm:$0xff]  ;;  %v1740_v14 = vld [vmem:[#allocation9 + $0x250] sm:$0xff] }
 0x1e8   : > { %1844 = vmatpush.msrb.mxu1 %v1831_v18  ;;  %1938 = vmatpush.msrb.mxu0 %v1890_v19  ;;  %v1987_v18 = vld [vmem:[#allocation11 + $0x3a0] sm:$0xff]  ;;  %v1739_v19 = vld [vmem:[#allocation9 + $0x248] sm:$0xff]  ;;  %v2473_v62 = vld [vmem:[%s3532_s7 + $0x170] sm:$0xff] }
 0x1e9   : > { %1659 = vmatpush.msra.mxu3 %v1606_v42  ;;  %1697 = vmatpush.msra.mxu2 %v1678_v22  ;;  %v1986_v42 = vld [vmem:[#allocation11 + $0x398] sm:$0xff]  ;;  %v1738_v22 = vld [vmem:[#allocation9 + $0x240] sm:$0xff] }
 0x1ea   : > { %1845 = vmatpush.msrb.mxu1 %v1830_v26  ;;  %1939 = vmatpush.msrb.mxu0 %v1889_v27  ;;  %v1834_v26 = vld [vmem:[#allocation11 + $0x2c0] sm:$0xff]  ;;  %v1985_v27 = vld [vmem:[#allocation11 + $0x390] sm:$0xff] }
 0x1eb   : > { %1660 = vmatpush.msra.mxu3 %v1605_v28  ;;  %1698 = vmatpush.msra.mxu2 %v1677_v45  ;;  %v1911_v28 = vld [vmem:[#allocation9 + $0x3b8] sm:$0xff] }
 0x1ec   : > { %1846 = vmatpush.msrb.mxu1 %v1829_v32  ;;  %1940 = vmatpush.msrb.mxu0 %v1888_v33  ;;  %v1982_v45 = vld [vmem:[#allocation11 + $0x378] sm:$0xff]  ;;  %v1910_v32 = vld [vmem:[#allocation9 + $0x3b0] sm:$0xff] }
 0x1ed   : > { %1941 = vmatmul.f32.vlgmr.msrb.gmra.mxu0 %v3250_v29  ;;  %1661 = vmatpush.msra.mxu3 %v1604_v11  ;;  %v1981_v33 = vld [vmem:[#allocation11 + $0x370] sm:$0xff]  ;;  %v1884_v11 = vld [vmem:[#allocation3 + $0x8] sm:$0xf0] }
 0x1ee   : > { %1699 = vmatpush.msra.mxu2 %v1676_v34  ;;  %1847 = vmatpush.msrb.mxu1 %v1828_v16  ;;  %v1983_v34 = vld [vmem:[#allocation11 + $0x380] sm:$0xff]  ;;  %v1920_v16 = vrot.slane %v1886_v2, 4  ;;  %v2452_v2 = vld [vmem:[%s3532_s7 + $0xc8] sm:$0xff] }
 0x1ef   : > { %1776 = vmatpush.msrb.mxu3 %v1753_v36  ;;  %v1909_v36 = vld [vmem:[#allocation9 + $0x3a8] sm:$0xff]  ;;  %2103 = vmatpush.msra.mxu0 %v2458_v56  ;;  %v2462_v56 = vld [vmem:[%s3532_s7 + $0x118] sm:$0xff] }
 0x1f0   : > { %2437 = vmatmul.msk.f32.vlgmr.msra.gmra.mxu3 %vm1183_vm3, %v1622_v6  ;;  %1700 = vmatpush.msra.mxu2 %v1675_v63  ;;  %v1837_v6 = vld [vmem:[#allocation11 + $0x2d8] sm:$0xff]  ;;  %v1980_v63 = vld [vmem:[#allocation11 + $0x368] sm:$0xff] }
 0x1f1   : > { %1848 = vmatpush.msrb.mxu1 %v1827_v13  ;;  %1777 = vmatpush.msrb.mxu3 %v1752_v25  ;;  %v1919_v13 = vrot.slane %v1884_v11, 4  ;;  %v1908_v25 = vld [vmem:[#allocation9 + $0x3a0] sm:$0xff] }
 0x1f2   : > { %1701 = vmatpush.msra.mxu2 %v1674_v38  ;;  %v1979_v38 = vld [vmem:[#allocation11 + $0x360] sm:$0xff]  ;;  %2104 = vmatpush.msra.mxu0 %v2457_v37 }
 0x1f3   : > { %1849 = vmatpush.msrb.mxu1 %v1826_v31  ;;  %1778 = vmatpush.msrb.mxu3 %v1751_v39  ;;  %v1907_v31 = vld [vmem:[#allocation9 + $0x398] sm:$0xff]  ;;  %v2451_v11 = vld [vmem:[%s3532_s7 + $0xc0] sm:$0xff] }
 0x1f4   : > { %1702 = vmatpush.msra.mxu2 %v1673_v41  ;;  %v1978_v39 = vld [vmem:[#allocation11 + $0x358] sm:$0xff]  ;;  %v1906_v41 = vld [vmem:[#allocation9 + $0x390] sm:$0xff] }
 0x1f5   : > { %1850 = vmatpush.msrb.mxu1 %v1825_v43  ;;  %1779 = vmatpush.msrb.mxu3 %v1750_v44  ;;  %v1977_v43 = vld [vmem:[#allocation11 + $0x350] sm:$0xff]  ;;  %v1905_v44 = vld [vmem:[#allocation9 + $0x388] sm:$0xff] }
 0x1f6   : > { %1703 = vmatpush.msra.mxu2 %v1672_v46  ;;  %v1976_v46 = vld [vmem:[#allocation11 + $0x348] sm:$0xff] }
 0x1f7   : > { %1851 = vmatpush.msrb.mxu1 %v1824_v51  ;;  %1780 = vmatpush.msrb.mxu3 %v1749_v7  ;;  %v1904_v51 = vld [vmem:[#allocation9 + $0x380] sm:$0xff] }
 0x1f8   : > { %1704 = vmatpush.msra.mxu2 %v1671_v47  ;;  %v1975_v7 = vld [vmem:[#allocation11 + $0x340] sm:$0xff]  ;;  %v1974_v47 = vld [vmem:[#allocation11 + $0x338] sm:$0xff] }
 0x1f9   : > { %1852 = vmatpush.msrb.mxu1 %v1823_v48  ;;  %1781 = vmatpush.msrb.mxu3 %v1748_v24  ;;  %v1973_v48 = vld [vmem:[#allocation11 + $0x330] sm:$0xff]  ;;  %v1972_v24 = vld [vmem:[#allocation11 + $0x328] sm:$0xff] }
 0x1fa   : > { %1705 = vmatpush.msra.mxu2 %v1670_v35  ;;  %v1971_v35 = vld [vmem:[#allocation11 + $0x320] sm:$0xff] }
 0x1fb   : > { %1853 = vmatpush.msrb.mxu1 %v1822_v50  ;;  %1782 = vmatpush.msrb.mxu3 %v1747_v4  ;;  %v1970_v50 = vld [vmem:[#allocation11 + $0x318] sm:$0xff]  ;;  %v1969_v4 = vld [vmem:[#allocation11 + $0x310] sm:$0xff] }
 0x1fc   : > { %1706 = vmatpush.msra.mxu2 %v1669_v17  ;;  %v1968_v17 = vld [vmem:[#allocation11 + $0x308] sm:$0xff] }
 0x1fd   : > { %1854 = vmatpush.msrb.mxu1 %v1821_v52  ;;  %1783 = vmatpush.msrb.mxu3 %v1746_v53  ;;  %v1967_v52 = vld [vmem:[#allocation11 + $0x300] sm:$0xff] }
 0x1fe   : > { %1707 = vmatpush.msra.mxu2 %v1668_v54 }
 0x1ff   : > { %1855 = vmatpush.msrb.mxu1 %v1820_v55  ;;  %1708 = vmatmul.f32.vlgmr.msra.gmra.mxu2 %v3226_v23  ;;  %v1838_v23 = vld [vmem:[#allocation11 + $0x2e0] sm:$0xff]  ;;  %v2063_v55 = vld [vmem:[%s3532_s7 + $0x78] sm:$0xff] }
 0x200   : > { %1784 = vmatpush.msrb.mxu3 %v1745_v58  ;;  %1870 = vmatpush.msrb.mxu2 %v1841_v49 }
 0x201   : > { %1856 = vmatpush.msrb.mxu1 %v1819_v59 }
 0x202   : > { %1785 = vmatpush.msrb.mxu3 %v1744_v40  ;;  %1871 = vmatpush.msrb.mxu2 %v1840_v61  ;;  %v2062_v61 = vld [vmem:[%s3532_s7 + $0x70] sm:$0xff] }
 0x203   : > { %1857 = vmatpush.msrb.mxu1 %v1818_v0  ;;  %v2489_v0 = vld [vmem:[%s3532_s7 + $0x1f0] sm:$0xff] }
 0x204   : > { %1786 = vmatpush.msrb.mxu3 %v1743_v1  ;;  %1858 = vmatmul.f32.vlgmr.msrb.gmra.mxu1 %v1769_v3  ;;  %v2061_v1 = vld [vmem:[%s3532_s7 + $0x68] sm:$0xff] }
 0x205   : > { %1872 = vmatpush.msrb.mxu2 %v1839_v9  ;;  %2019 = vmatpush.msra.mxu1 %v1990_v20  ;;  %v2456_v9 = vld [vmem:[%s3532_s7 + $0xe8] sm:$0xff] }
 0x206   : > { %1787 = vmatpush.msrb.mxu3 %v1742_v8  ;;  %v2472_v20 = vld [vmem:[%s3532_s7 + $0x168] sm:$0xff]  ;;  %2105 = vmatpush.msra.mxu0 %v2456_v9 }
 0x207   : > { %1873 = vmatpush.msrb.mxu2 %v1838_v23  ;;  %2020 = vmatpush.msra.mxu1 %v1989_v60  ;;  %v2060_v23 = vld [vmem:[%s3532_s7 + $0x60] sm:$0xff] }
 0x208   : > { %1788 = vmatpush.msrb.mxu3 %v1741_v5  ;;  %v2455_v60 = vld [vmem:[%s3532_s7 + $0xe0] sm:$0xff] }
 0x209   : > { %1874 = vmatpush.msrb.mxu2 %v1837_v6  ;;  %2021 = vmatpush.msra.mxu1 %v1988_v10  ;;  %v2471_v5 = vld [vmem:[%s3532_s7 + $0x160] sm:$0xff] }
 0x20a   : > { %1789 = vmatpush.msrb.mxu3 %v1740_v14  ;;  %2106 = vmatpush.msra.mxu0 %v2455_v60  ;;  %v2487_v6 = vld [vmem:[%s3532_s7 + $0x1e0] sm:$0xff]  ;;  %v2059_v14 = vld [vmem:[%s3532_s7 + $0x58] sm:$0xff] }
 0x20b   : > { %1875 = vmatpush.msrb.mxu2 %v1836_v15  ;;  %2022 = vmatpush.msra.mxu1 %v1987_v18  ;;  %v2454_v15 = vld [vmem:[%s3532_s7 + $0xd8] sm:$0xff] }
 0x20c   : > { %1790 = vmatpush.msrb.mxu3 %v1739_v19  ;;  %v2470_v18 = vld [vmem:[%s3532_s7 + $0x158] sm:$0xff]  ;;  %2107 = vmatpush.msra.mxu0 %v2454_v15  ;;  %v2443_v15 = vld [vmem:[%s3532_s7 + $0x80] sm:$0xff] }
 0x20d   : > { %1876 = vmatpush.msrb.mxu2 %v1835_v21  ;;  %2023 = vmatpush.msra.mxu1 %v1986_v42  ;;  %v2486_v42 = vld [vmem:[%s3532_s7 + $0x1d8] sm:$0xff] }
 0x20e   : > { %1791 = vmatpush.msrb.mxu3 %v1738_v22  ;;  %v2058_v22 = vld [vmem:[%s3532_s7 + $0x50] sm:$0xff] }
 0x20f   : > { %1877 = vmatpush.msrb.mxu2 %v1834_v26  ;;  %2024 = vmatpush.msra.mxu1 %v1985_v27  ;;  %v2453_v26 = vld [vmem:[%s3532_s7 + $0xd0] sm:$0xff] }
 0x210   : > { %1792 = vmatmul.f32.vlgmr.msrb.gmra.mxu3 %v1769_v3  ;;  %2440 = vmatmul.msk.f32.vlgmr.msrb.gmra.mxu2 %vm1183_vm3, %v3238_v12  ;;  %v1921_v12 = vsel %vm421_vm0, %v1919_v13, %v1920_v16  ;;  %v2488_v3 = vld [vmem:[%s3532_s7 + $0x1e8] sm:$0xff]  ;;  %v2469_v27 = vld [vmem:[%s3532_s7 + $0x150] sm:$0xff]  ;;  %v2483_v16 = vld [vmem:[%s3532_s7 + $0x1c0] sm:$0xff] }
 0x211   : > { %1953 = vmatpush.msra.mxu3 %v1911_v28  ;;  %1991 = vmatpush.msra.mxu2 %v1982_v45  ;;  %v2485_v28 = vld [vmem:[%s3532_s7 + $0x1d0] sm:$0xff]  ;;  %v2057_v45 = vld [vmem:[%s3532_s7 + $0x48] sm:$0xff]  ;;  %v2466_v13 = vld [vmem:[%s3532_s7 + $0x138] sm:$0xff] }
 0x212   : > { %2025 = vmatpush.msra.mxu1 %v1984_v30  ;;  %2108 = vmatpush.msra.mxu0 %v2453_v26  ;;  %v2468_v30 = vld [vmem:[%s3532_s7 + $0x148] sm:$0xff] }
 0x213   : > { %1954 = vmatpush.msra.mxu3 %v1910_v32  ;;  %1992 = vmatpush.msra.mxu2 %v1981_v33  ;;  %v2484_v32 = vld [vmem:[%s3532_s7 + $0x1c8] sm:$0xff]  ;;  %v2056_v33 = vld [vmem:[%s3532_s7 + $0x40] sm:$0xff] }
 0x214   : > { %2026 = vmatpush.msra.mxu1 %v1983_v34  ;;  %2109 = vmatpush.msra.mxu0 %v2452_v2  ;;  %v2467_v34 = vld [vmem:[%s3532_s7 + $0x140] sm:$0xff] }
 0x215   : > { %1955 = vmatpush.msra.mxu3 %v1909_v36  ;;  %1993 = vmatpush.msra.mxu2 %v1980_v63  ;;  %v2055_v36 = vld [vmem:[%s3532_s7 + $0x38] sm:$0xff] }
 0x216   : > { %2442 = vmatmul.msk.f32.vlgmr.msra.gmra.mxu1 %vm1183_vm3, %v1921_v12  ;;  %2110 = vmatpush.msra.mxu0 %v2451_v11  ;;  %v2450_v63 = vld [vmem:[%s3532_s7 + $0xb8] sm:$0xff] }
 0x217   : > { %1956 = vmatpush.msra.mxu3 %v1908_v25  ;;  %1994 = vmatpush.msra.mxu2 %v1979_v38  ;;  %v2482_v25 = vld [vmem:[%s3532_s7 + $0x1b8] sm:$0xff] }
 0x218   : > { %2142 = vmatpush.msrb.mxu1 %v2474_v57  ;;  %2111 = vmatpush.msra.mxu0 %v2450_v63  ;;  %v2478_v57 = vld [vmem:[%s3532_s7 + $0x198] sm:$0xff] }
 0x219   : > { %1957 = vmatpush.msra.mxu3 %v1907_v31  ;;  %1995 = vmatpush.msra.mxu2 %v1978_v39  ;;  %v2054_v31 = vld [vmem:[%s3532_s7 + $0x30] sm:$0xff] }
 0x21a   : > { %2143 = vmatpush.msrb.mxu1 %v2473_v62  ;;  %v2449_v39 = vld [vmem:[%s3532_s7 + $0xb0] sm:$0xff] }
 0x21b   : > { %1958 = vmatpush.msra.mxu3 %v1906_v41  ;;  %1996 = vmatpush.msra.mxu2 %v1977_v43  ;;  %v2461_v62 = vld [vmem:[%s3532_s7 + $0x110] sm:$0xff] }
 0x21c   : > { %2144 = vmatpush.msrb.mxu1 %v2472_v20  ;;  %2112 = vmatpush.msra.mxu0 %v2449_v39 }
 0x21d   : > { %1959 = vmatpush.msra.mxu3 %v1905_v44  ;;  %1997 = vmatpush.msra.mxu2 %v1976_v46  ;;  %v2465_v44 = vld [vmem:[%s3532_s7 + $0x130] sm:$0xff] }
 0x21e   : > { %2145 = vmatpush.msrb.mxu1 %v2471_v5  ;;  %v2481_v46 = vld [vmem:[%s3532_s7 + $0x1b0] sm:$0xff] }
 0x21f   : > { %1960 = vmatpush.msra.mxu3 %v1904_v51  ;;  %1998 = vmatpush.msra.mxu2 %v1975_v7  ;;  %v2053_v7 = vld [vmem:[%s3532_s7 + $0x28] sm:$0xff] }
 0x220   : > { %2441 = vmatmul.msk.f32.vlgmr.msra.gmra.mxu3 %vm1183_vm3, %v1921_v12  ;;  %2146 = vmatpush.msrb.mxu1 %v2470_v18  ;;  %v2459_v18 = vld [vmem:[%s3532_s7 + $0x100] sm:$0xff] }
 0x221   : > { %1999 = vmatpush.msra.mxu2 %v1974_v47  ;;  %2064 = vmatpush.msrb.mxu3 %v2063_v55  ;;  %v2448_v47 = vld [vmem:[%s3532_s7 + $0xa8] sm:$0xff]  ;;  %v2446_v55 = vld [vmem:[%s3532_s7 + $0x98] sm:$0xff] }
 0x222   : > { %2147 = vmatpush.msrb.mxu1 %v2469_v27  ;;  %2113 = vmatpush.msra.mxu0 %v2448_v47 }
 0x223   : > { %2000 = vmatpush.msra.mxu2 %v1973_v48  ;;  %2065 = vmatpush.msrb.mxu3 %v2062_v61  ;;  %v2464_v48 = vld [vmem:[%s3532_s7 + $0x128] sm:$0xff] }
 0x224   : > { %2148 = vmatpush.msrb.mxu1 %v2468_v30 }
 0x225   : > { %2001 = vmatpush.msra.mxu2 %v1972_v24  ;;  %2066 = vmatpush.msrb.mxu3 %v2061_v1  ;;  %v2480_v24 = vld [vmem:[%s3532_s7 + $0x1a8] sm:$0xff] }
 0x226   : > { %2149 = vmatpush.msrb.mxu1 %v2467_v34 }
 0x227   : > { %2002 = vmatpush.msra.mxu2 %v1971_v35  ;;  %2067 = vmatpush.msrb.mxu3 %v2060_v23  ;;  %v2052_v35 = vld [vmem:[%s3532_s7 + $0x20] sm:$0xff]  ;;  %v2444_v23 = vld [vmem:[%s3532_s7 + $0x88] sm:$0xff] }
 0x228   : > { %2150 = vmatpush.msrb.mxu1 %v2466_v13 }
 0x229   : > { %2003 = vmatpush.msra.mxu2 %v1970_v50  ;;  %2068 = vmatpush.msrb.mxu3 %v2059_v14  ;;  %v2447_v50 = vld [vmem:[%s3532_s7 + $0xa0] sm:$0xff] }
 0x22a   : > { %2151 = vmatpush.msrb.mxu1 %v2465_v44  ;;  %2114 = vmatpush.msra.mxu0 %v2447_v50  ;;  %v2048_v14 = vld [vmem:[%s3532_s7] sm:$0xff] }
 0x22b   : > { %2004 = vmatpush.msra.mxu2 %v1969_v4  ;;  %2069 = vmatpush.msrb.mxu3 %v2058_v22  ;;  %v2463_v4 = vld [vmem:[%s3532_s7 + $0x120] sm:$0xff] }
 0x22c   : > { %2152 = vmatpush.msrb.mxu1 %v2464_v48  ;;  %2115 = vmatpush.msra.mxu0 %v2446_v55 }
 0x22d   : > { %2005 = vmatpush.msra.mxu2 %v1968_v17  ;;  %2070 = vmatpush.msrb.mxu3 %v2057_v45  ;;  %v2479_v17 = vld [vmem:[%s3532_s7 + $0x1a0] sm:$0xff] }
 0x22e   : > { %v3284_v40 = vpop.f32.mrf.mxu0  ;;  %2153 = vmatpush.msrb.mxu1 %v2463_v4  ;;  %v2573_v45 = vld [vmem:[%s3531_s6] ss:$0 sm:$0xff] }
 0x22f   : > { %2006 = vmatpush.msra.mxu2 %v1967_v52  ;;  %2071 = vmatpush.msrb.mxu3 %v2056_v33 }
 0x230   : > { %2007 = vmatmul.f32.vlgmr.msra.gmra.mxu2 %v3250_v29  ;;  %v2490_v29 = vld [vmem:[%s3532_s7 + $0x1f8] sm:$0xff]  ;;  %2154 = vmatpush.msrb.mxu1 %v2462_v56 }
 0x231   : > { %2181 = vmatpush.msrb.mxu2 %v2490_v29  ;;  %2072 = vmatpush.msrb.mxu3 %v2055_v36 }
 0x232   : > { %2155 = vmatpush.msrb.mxu1 %v2461_v62 }
 0x233   : > { %2182 = vmatpush.msrb.mxu2 %v2489_v0  ;;  %2073 = vmatpush.msrb.mxu3 %v2054_v31  ;;  %v2477_v0 = vld [vmem:[%s3532_s7 + $0x190] sm:$0xff] }
 0x235   : > { %2183 = vmatpush.msrb.mxu2 %v2488_v3  ;;  %2074 = vmatpush.msrb.mxu3 %v2053_v7  ;;  %v2049_v3 = vld [vmem:[%s3532_s7 + $0x8] sm:$0xff] }
 0x237   : > { %2184 = vmatpush.msrb.mxu2 %v2487_v6  ;;  %2075 = vmatpush.msrb.mxu3 %v2052_v35 }
 0x239   : > { %2185 = vmatpush.msrb.mxu2 %v2486_v42 }
 0x23b   : > { %2186 = vmatpush.msrb.mxu2 %v2485_v28 }
 0x23d   : > { %2187 = vmatpush.msrb.mxu2 %v2484_v32 }
 0x23f   : > { %2188 = vmatpush.msrb.mxu2 %v2483_v16 }
 0x241   : > { %2189 = vmatpush.msrb.mxu2 %v2482_v25 }
 0x242   : > { %v3324_v10 = vpop.f32.mrf.mxu0 }
 0x243   : > { %2190 = vmatpush.msrb.mxu2 %v2481_v46 }
 0x245   : > { %2191 = vmatpush.msrb.mxu2 %v2480_v24 }
 0x247   : > { %v3264_v54 = vpop.f32.mrf.mxu2  ;;  %2192 = vmatpush.msrb.mxu2 %v2479_v17 }
 0x249   : > { %2193 = vmatpush.msrb.mxu2 %v2478_v57 }
 0x24b   : > { %2194 = vmatpush.msrb.mxu2 %v2477_v0 }
 0x24f   : > { %v3278_v58 = vpop.f32.mrf.mxu1 }
 0x257   : > { %v3310_v8 = vpop.f32.mrf.mxu1 }
 0x25c   : > { %v1813_v38 = vpop.f32.mrf.mxu0 }
 0x260   : > { %v3262_v53 = vpop.f32.mrf.mxu3  ;;  %v3390_v12 = vpop.f32.mrf.mxu1 }
 0x261   : > { %v3280_v49 = vpop.f32.mrf.mxu2  ;;  %v1433_v51 = vadd.f32 %v3262_v53, %v3264_v54  ;;  %v2051_v54 = vld [vmem:[%s3532_s7 + $0x18] sm:$0xff] }
 0x262   : > { %2076 = vmatpush.msrb.mxu3 %v2051_v54 }
 0x263   : > { %v1456_v52 = vadd.f32 %v3284_v40, %v1433_v51  ;;  %v2445_v40 = vld [vmem:[%s3532_s7 + $0x90] sm:$0xff] }
 0x264   : > { %2116 = vmatpush.msra.mxu0 %v2445_v40 }
 0x265   : > { %v1476_v9 = vadd.f32 %v3278_v58, %v1456_v52  ;;  %v2476_v58 = vld [vmem:[%s3532_s7 + $0x188] sm:$0xff] }
 0x266   : > { %2117 = vmatpush.msra.mxu0 %v2444_v23  ;;  %2195 = vmatpush.msrb.mxu2 %v2476_v58 }
 0x268   : > { %v3282_v59 = vpop.f32.mrf.mxu3  ;;  %2118 = vmatpush.msra.mxu0 %v2443_v15 }
 0x269   : > { %v3335_v19 = vpop.f32.mrf.mxu2  ;;  %v1541_v53 = vadd.f32 %v3280_v49, %v3282_v59  ;;  %v2050_v59 = vld [vmem:[%s3532_s7 + $0x10] sm:$0xff] }
 0x26a   : > { %v1942_v60 = vpop.f32.mrf.mxu0  ;;  %2077 = vmatpush.msrb.mxu3 %v2050_v59 }
 0x26b   : > { %v1561_v1 = vadd.f32 %v3310_v8, %v1541_v53  ;;  %v2460_v8 = vld [vmem:[%s3532_s7 + $0x108] sm:$0xff] }
 0x26c   : > { %2078 = vmatpush.msrb.mxu3 %v2049_v3  ;;  %2156 = vmatpush.msrb.mxu1 %v2460_v8 }
 0x26d   : > { %v1581_v42 = vadd.f32 %v3335_v19, %v1561_v1 }
 0x26e   : > { %2079 = vmatpush.msrb.mxu3 %v2048_v14  ;;  %2157 = vmatpush.msrb.mxu1 %v2459_v18 }
 0x273   : > { %v3337_v21 = vpop.f32.mrf.mxu3 }
 0x274   : > { %v1664_v29 = vadd.f32 %v3337_v21, %v3324_v10  ;;  %v2475_v21 = vld [vmem:[%s3532_s7 + $0x180] sm:$0xff] }
 0x275   : > { %2196 = vmatpush.msrb.mxu2 %v2475_v21 }
 0x276   : > { %v1666_v5 = vadd.f32 %v1664_v29, %v1476_v9 }
 0x281   : > { %v1859_v49 = vpop.f32.mrf.mxu1 }
 0x282   : > { %v1709_v41 = vpop.f32.mrf.mxu2 }
 0x283   : > { %v1730_v6 = vadd.f32 %v3390_v12, %v1709_v41 }
 0x285   : > { %v1732_v27 = vadd.f32 %v1730_v6, %v1581_v42 }
 0x293   : > { %v1793_v43 = vpop.f32.mrf.mxu3  ;;  %v1879_v61 = vpop.f32.mrf.mxu2 }
 0x294   : > { %v1814_v20 = vadd.f32 %v1813_v38, %v1793_v43  ;;  %v1880_v26 = vadd.f32 %v1879_v61, %v1859_v49  ;;  %v2028_v2 = vpop.f32.mrf.mxu1  ;;  %v2046_v43 = vld [vmem:[%s3533_s8] sm:$0x1] }
 0x296   : > { %v1816_v22 = vadd.f32 %v1814_v20, %v1666_v5  ;;  %v1882_v32 = vadd.f32 %v1880_v26, %v1732_v27 }
 0x2a3   : > { %v1962_v37 = vpop.f32.mrf.mxu3 }
 0x2a4   : > { %v1963_v10 = vadd.f32 %v1962_v37, %v1942_v60 }
 0x2a6   : > { %v1965_v28 = vadd.f32 %v1963_v10, %v1816_v22 }
 0x2a8   : > { %v2036_v11 = vadd.f32 %v2573_v45, %v1965_v28 }
 0x2aa   : > { %v2037_v16 = vmax.f32 %v2036_v11, 0.0 }
 0x2b3   : > { %v2008_v30 = vpop.f32.mrf.mxu2 }
 0x2b4   : > { %v2029_v33 = vadd.f32 %v2028_v2, %v2008_v30 }
 0x2b6   : > { %v2031_v19 = vadd.f32 %v2029_v33, %v1882_v32 }
 0x2b8   : > { %v2038_v34 = vadd.f32 %v2573_v45, %v2031_v19 }
 0x2ba   : > { %v2039_v36 = vmax.f32 %v2038_v34, 0.0 }
 0x2bc   : > { %v2040_v63 = vmax.f32 %v2037_v16, %v2039_v36 }
 0x2be   : > { %2041 = vst [vmem:[#allocation4] sm:$0xff] %v2040_v63 }
 0x2c5   : > { %v2042_v13 = vld [vmem:[#allocation4] sm:$0x7f] }
 0x2c6   : > { %v2043_v25 = vld [vmem:[#allocation4 + $0x1] sm:$0x7f] }
 0x2c7   : > { %v2044_v38 = vmax.f32 %v2042_v13, %v2043_v25 }
 0x2c9   : > { %2045 = vst [vmem:[#allocation5] sm:$0x7f] %v2044_v38 }
 0x2d0   : > { %v2047_v12 = vld [vmem:[#allocation5] sm:$0x1]  ;;  %v2085_v31 = vld [vmem:[#allocation5 + $0x2] sm:$0x1]  ;;  %v2124_v39 = vld [vmem:[#allocation5 + $0x4] sm:$0x1] }
 0x2d1   : > { %2080 = vmatmul.f32.vlgmr.msrb.gmra.mxu3 %v2047_v12  ;;  %2119 = vmatmul.f32.vlgmr.msra.gmra.mxu0 %v2085_v31  ;;  %v2163_v41 = vld [vmem:[#allocation5 + $0x6] sm:$0x1] }
 0x2d2   : > { %2158 = vmatmul.f32.vlgmr.msrb.gmra.mxu1 %v2124_v39  ;;  %2197 = vmatmul.f32.vlgmr.msrb.gmra.mxu2 %v2163_v41 }
 0x34e   : > { %v2120_v51 = vpop.f32.mrf.mxu0 }
 0x34f   : > { %v2159_v47 = vpop.f32.mrf.mxu1 }
 0x354   : > { %v2081_v44 = vpop.f32.mrf.mxu3 }
 0x355   : > { %v2084_v46 = vadd.f32 %v2081_v44, %v2046_v43  ;;  %v2198_v24 = vpop.f32.mrf.mxu2 }
 0x357   : > { %v2123_v7 = vadd.f32 %v2120_v51, %v2084_v46 }
 0x359   : > { %v2162_v48 = vadd.f32 %v2159_v47, %v2123_v7 }
 0x35b   : > { %v2201_v35 = vadd.f32 %v2198_v24, %v2162_v48 }
 0x35d   : > { %2203 = vst.msk [vmem:[%s374_s18] sm:$0x1] %vm2202_vm10, %v2201_v35 }
 0x35e   : > { %2691 = shalt.err (!%p2688_p8)
}
 0x35f   : > { %2510 = dma.vmem_to_hbm [thread:$0]  (%p2832_p5), %s2216_s21, 16, %s2218_s24, %s2205_s26  }
 0x360 PF: > { %p2532_p9 = scmp.ge.s32.totalorder %s2734_s12, 2  ;;  %s2229_s25 = sand.u32 1, %s2722_s30  }
 0x361   : > { %s2230_s2 = scalar_lea.sflag [#allocation8], %s2229_s25 }
 0x362   : > { %p2523_p10 = pnand %p2532_p9, %p2836_p6 }
 0x364   : > { %p2524_p11 = pneg %p2523_p10 }
 0x366   : > { %2717 = dma.done.wait (%p2524_p11), %s2230_s2, 16  }
 0x367   : > { %2719 = vsyncadd (%p2524_p11), %s2230_s2, 4294967280  ;;  %s3546_s28 = sld [smem:[#allocation16_spill]]  ;;  %p21_p12 = scmp.ge.s32.totalorder %s2819_s15, 4  }
 0x368   : > { %s3547_s11 = sld [smem:[#allocation17_spill]]  ;;  %s3548_s30 = smov %s2726_s10 }
 0x369   : > { %s3550_s12 = smov %s2819_s15  ;;  %23 = sbr.rel (!%p21_p12) target bundleno = 8 (0x8), region = 123 }
 0x36d   : > { %s3549_s10 = smov %s3546_s28 }
 0x36e   :  { %2235 = vsyncpa [#allocation7], 1 }
 0x36f   :  { %2237 = vsyncpa [#allocation7 + $0x1], 1 }
 0x370   :  { %2238 = vsyncpa [#allocation10], 1 }
 0x371   :  { %2239 = vsyncpa [#allocation8], 1 }
 0x372   :  { %2241 = vsyncpa [#allocation8 + $0x1], 1 }

</bundles_post_ra>
